<compile_context>
chip_gen: v6e
topology: v6e:2x2x1
jax: 0.10.0
libtpu: 0.0.40
codegen_flags: <defaults>
</compile_context>

<pallas_src>
import jax
import jax.numpy as jnp
import numpy as np
from jax.experimental import pallas as pl
from jax.experimental.pallas import tpu as pltpu


def _relu_conv1x1_kernel(x_ref, w_ref, o_ref):
    # x_ref: (1, C_in, HW)    -- resident across the output-channel grid axis
    # w_ref: (TILE_CO, C_in)  -- streamed weight-row tile (double-buffered)
    # o_ref: (1, TILE_CO, HW)
    x = jnp.maximum(x_ref[0, :, :], 0.0)  # fused ReLU (VPU, hidden under MXU)
    o_ref[0, :, :] = jnp.dot(
        w_ref[...], x, preferred_element_type=jnp.float32
    ).astype(o_ref.dtype)


def _pick_co_tile(c_out, max_tile=256):
    """Largest multiple-of-8 divisor of c_out that is <= max_tile (else c_out)."""
    cands = [t for t in range(8, min(max_tile, c_out) + 1, 8) if c_out % t == 0]
    return max(cands) if cands else c_out


def relu_conv1x1(x_nchw, weight_oi):
    """x_nchw: (N, C_in, H, W) f32; weight_oi: (C_out, C_in) f32 (1x1 conv kernel)."""
    n, c_in, h, w = x_nchw.shape
    c_out = weight_oi.shape[0]
    hw = h * w

    # Free reshape: NCHW is already channels-first / spatially contiguous.
    x_cf = x_nchw.reshape(n, c_in, hw)

    tile_co = _pick_co_tile(c_out)  # 176 for c_out=1232 -> 7 exact tiles
    n_co = c_out // tile_co

    out_cf = pl.pallas_call(
        _relu_conv1x1_kernel,
        out_shape=jax.ShapeDtypeStruct((n, c_out, hw), jnp.float32),
        grid=(n, n_co),
        in_specs=[
            # x: held resident while the weight streams over output channels.
            pl.BlockSpec((1, c_in, hw), lambda b, j: (b, 0, 0)),
            # weight: one tile of output-channel rows per grid step.
            pl.BlockSpec((tile_co, c_in), lambda b, j: (j, 0)),
        ],
        out_specs=pl.BlockSpec((1, tile_co, hw), lambda b, j: (b, j, 0)),
        compiler_params=pltpu.CompilerParams(
            # Both grid axes are independent -> v7x's two TCs split the tiles.
            dimension_semantics=("parallel", "parallel"),
        ),
        cost_estimate=pl.CostEstimate(
            flops=2 * n * hw * c_in * c_out,
            transcendentals=0,
            bytes_accessed=4 * (n * c_in * hw + c_out * c_in + n * c_out * hw),
        ),
    )(x_cf, weight_oi)

    # Free reshape back to NCHW.
    return out_cf.reshape(n, c_out, h, w)


if __name__ == "__main__":
    # Shapes exactly matching the module's forward: (1, 1232, 14, 14), 1x1 conv 1232->1232.
    N, C, H, W = 1, 1232, 14, 14

    key = jax.random.PRNGKey(0)
    kx, kw = jax.random.split(key)
    x = jax.random.normal(kx, (N, C, H, W), dtype=jnp.float32)
    # Conv2d(1232, 1232, 1, bias=False) kaiming-uniform-like init,
    # weight (C_out, C_in, 1, 1) squeezed to (C_out, C_in).
    bound = 1.0 / np.sqrt(C)  # fan_in = C_in * 1 * 1
    weight = jax.random.uniform(
        kw, (C, C), dtype=jnp.float32, minval=-bound, maxval=bound
    )

    fn = jax.jit(relu_conv1x1)
    out = jax.block_until_ready(fn(x, weight))

    # Pure-JAX reference: ReLU then 1x1 conv == per-pixel channel matmul.
    ref = jnp.einsum("oi,nihw->nohw", weight, jnp.maximum(x, 0.0))
    np.testing.assert_allclose(np.asarray(out), np.asarray(ref), rtol=1e-5, atol=1e-4)

    assert out.shape == (N, C, H, W)
    print("KERNEL_OK")
</pallas_src>

<mosaic_0001>
module attributes {stable_mosaic.version = 11 : i64} {
  func.func @_relu_conv1x1_kernel(%arg0: i32, %arg1: i32, %arg2: memref<1x1232x196xf32, #tpu.memory_space<vmem>>, %arg3: memref<176x1232xf32, #tpu.memory_space<vmem>>, %arg4: memref<1x176x196xf32, #tpu.memory_space<vmem>>) attributes {dimension_semantics = [#tpu.dimension_semantics<parallel>, #tpu.dimension_semantics<parallel>], iteration_bounds = array<i64: 1, 7>, scalar_prefetch = 0 : i64, scratch_operands = 0 : i64, tpu.core_type = #tpu.core_type<tc>, window_params = [{transform_indices = @transform_0, window_bounds = array<i64: 1, 1232, 196>}, {transform_indices = @transform_1, window_bounds = array<i64: 176, 1232>}, {transform_indices = @transform_2, window_bounds = array<i64: 1, 176, 196>}]} {
    %c0 = arith.constant 0 : index
    %c0_0 = arith.constant 0 : index
    %c0_1 = arith.constant 0 : index
    %0 = vector.load %arg2[%c0, %c0_0, %c0_1] : memref<1x1232x196xf32, #tpu.memory_space<vmem>>, vector<1x1232x196xf32>
    %1 = vector.shape_cast %0 : vector<1x1232x196xf32> to vector<1232x196xf32>
    %cst = arith.constant 0.000000e+00 : f32
    %2 = vector.broadcast %cst : f32 to vector<1232x196xf32>
    %3 = arith.maximumf %1, %2 : vector<1232x196xf32>
    %c0_2 = arith.constant 0 : index
    %c0_3 = arith.constant 0 : index
    %4 = vector.load %arg3[%c0_2, %c0_3] : memref<176x1232xf32, #tpu.memory_space<vmem>>, vector<176x1232xf32>
    %cst_4 = arith.constant dense<0.000000e+00> : vector<176x196xf32>
    %5 = tpu.matmul %4, %3, %cst_4 {dimension_numbers = #tpu.dot_dimension_numbers<[1], [0], [0], [1], [0, 0, 1, 1], [], []>} : vector<176x1232xf32>, vector<1232x196xf32>, vector<176x196xf32> -> vector<176x196xf32>
    %c0_5 = arith.constant 0 : index
    %c0_6 = arith.constant 0 : index
    %c0_7 = arith.constant 0 : index
    %6 = vector.load %arg4[%c0_5, %c0_6, %c0_7] : memref<1x176x196xf32, #tpu.memory_space<vmem>>, vector<1x176x196xf32>
    %7 = vector.shape_cast %6 : vector<1x176x196xf32> to vector<176x196xf32>
    %8 = vector.shape_cast %5 : vector<176x196xf32> to vector<1x176x196xf32>
    tpu.vector_store %arg4[%c0_5, %c0_6, %c0_7], %8 {strides = array<i32>} : memref<1x176x196xf32, #tpu.memory_space<vmem>>, vector<1x176x196xf32>,
    return
  }
  func.func @transform_0(%arg0: i32, %arg1: i32) -> (i32, i32, i32) {
    %c0_i32 = arith.constant 0 : i32
    %c0_i32_0 = arith.constant 0 : i32
    %c0_i32_1 = arith.constant 0 : i32
    return %arg0, %c0_i32, %c0_i32_0 : i32, i32, i32
  }
  func.func @transform_1(%arg0: i32, %arg1: i32) -> (i32, i32) {
    %c0_i32 = arith.constant 0 : i32
    %c0_i32_0 = arith.constant 0 : i32
    return %arg1, %c0_i32 : i32, i32
  }
  func.func @transform_2(%arg0: i32, %arg1: i32) -> (i32, i32, i32) {
    %c0_i32 = arith.constant 0 : i32
    %c0_i32_0 = arith.constant 0 : i32
    return %arg0, %arg1, %c0_i32 : i32, i32, i32
  }
}

</mosaic_0001>

<bundles_post_ra>
// kernel: relu_conv1x1.1
= control target key start
LH: loop header
LB: loop body
LE: loop exit
PB: predicated region body
PF: predicated region fallthrough
CT: control target
= control target key end

     0   :  { %7 = vsyncpa [#allocation3], 0  ;;  %s4132_s0 = inlined_call_operand.vmem [shape: f32[1,1232,196], index: 0, kind: input, shape index: {}]   ;;  %s4133_s1 = inlined_call_operand.hbm [shape: f32[1232,1232], index: 1, kind: input, shape index: {}]   ;;  %s4134_s2 = inlined_call_operand.vmem [shape: f32[1,1232,196], index: 2, kind: output, shape index: {}]  }
   0x1   :  { %9 = vsyncpa [#allocation3 + $0x1], 0  ;;  %s2502_s9 = smov 0   ;;  %s2504_s10 = smov 0  }
   0x2   :  { %s2506_s11 = smov 0   ;;  %s2508_s12 = smov 0  }
   0x3   :  { %s2510_s13 = smov 0   ;;  %s2512_s14 = smov 0  }
   0x4 LB: > { %s2257_s15 = sadd.s32 4294967295, %s2482_s14   ;;  %s24_s16 = sadd.s32 1, %s2478_s13  ;;  %s2482_s14 = sphi %s2512_s14, %s15_s14   ;;  %s2478_s13 = sphi %s2510_s13, %s4203_s13   ;;  %s2474_s12 = sphi %s2508_s12, %s4202_s12   ;;  %s2470_s11 = sphi %s2506_s11, %s4201_s11   ;;  %s2466_s10 = sphi %s2504_s10, %s4200_s10   ;;  %s2462_s9 = sphi %s2502_s9, %s4199_s9  }
   0x5   : > { %p25_p0 = scmp.ge.s32.totalorder %s24_s16, 7  ;;  %s60_s17 = sadd.s32 1, %s2470_s11 }
   0x6   : > { %p67_p1 = scmp.ne.s32.totalorder %s2470_s11, %s2466_s10  ;;  %p68_p2 = scmp.eq.s32.totalorder %s2482_s14, 0 }
   0x7   : > { %s4205_s16 = smov (%p25_p0, %s24_s16), 0  ;;  %p73_p4 = scmp.ne.s32.totalorder %s2466_s10, %s2462_s9 }
   0x8   : > { %p69_p3 = por %p68_p2, %p67_p1  ;;  %s57_s18 = ssub.s32 %s2478_s13, %s4205_s16 }
   0x9   : > { %p74_p5 = scmp.eq.s32.totalorder %s2257_s15, 0  ;;  %p58_p6 = scmp.eq.s32.totalorder %s57_s18, 0 }
   0xa   : > { %p2352_p8 = scmp.lt.s32.totalorder %s2482_s14, 7  ;;  %s133_s21 = sand.u32 1, %s2470_s11  }
   0xb   : > { %p2541_p7 = por %p74_p5, %p73_p4  ;;  %s2343_s22 = smul.u32 1760, %s133_s21 }
   0xc   : > { %s2547_s20 = scalar_select %p58_p6, %s2470_s11, %s60_s17  }
   0xd   : > { %s2353_s23 = smul.u32 28160, %s2478_s13  ;;  %p2551_p9 = pnand %p2352_p8, %p69_p3 }
   0xe   : > { %s137_s28 = scalar_lea.vmem [#allocation2], %s2343_s22  ;;  %p2263_p10 = scmp.ge.s32.totalorder %s2482_s14, 1 }
   0xf   : > { %s144_s27 = scalar_lea.hbm %s4133_s1, %s2353_s23  ;;  %s145_s29 = sshll.u32 %s137_s28, 4  ;;  %s146_s29 = int_to_ptr.vmem [resolvable:$true] %s145_s29 }
  0x10   : > { %s134_s30 = scalar_lea.sflag [#allocation3], %s133_s21  ;;  %p2406_p11 = pneg %p2551_p9 }
  0x11   : > { %s2417_s3 = scalar_lea.vmem %s146_s29, 28160  ;;  %s2484_s4 = smov [#allocation2]  }
  0x12   : > { %p2418_p12 = scmp.ne.s32.totalorder %s146_s29, %s2417_s3  ;;  %s2422_s5 = sshll.u32 %s2484_s4, 4  ;;  %s2423_s5 = int_to_ptr.vmem [resolvable:$false] %s2422_s5 }
  0x13   : > { %s2424_s6 = scalar_lea.vmem %s2423_s5, 56320  ;;  %p2425_p1 = scmp.lt.s32.totalorder %s146_s29, %s2423_s5 }
  0x14   : > { %p2420_p13 = pnand %p2418_p12, %p2406_p11  ;;  %p2426_p2 = scmp.lt.s32.totalorder %s2424_s6, %s2417_s3 }
  0x16   : > { %p2421_p0 = pneg %p2420_p13  ;;  %p2427_p3 = por %p2426_p2, %p2425_p1 }
  0x18   : > { %p2428_p4 = pnand %p2427_p3, %p2421_p0 }
  0x1a   : > { %2431 = shalt.err (!%p2428_p4)
}
  0x1b   : > { %s2485_s7 = smov 1280   ;;  %s2486_s8 = smov 80  }
  0x1c   : > { %2351 = dma.hbm_to_vmem [thread:$0]  (!%p2551_p9), %s144_s27, 28160, %s146_s29, %s134_s30, %s2485_s7, %s2485_s7, %s2486_s8  }
  0x1d   : > { %p153_p5 = scmp.lt.s32.totalorder %s2482_s14, 8 }
  0x1f   : > { %p154_p6 = pnand %p2263_p10, %p153_p5 }
  0x21   : > { %157 = sbr.rel (%p154_p6) target bundleno = 554 (0x22a), region = 28 }
  0x26   : > { %s159_s9 = sand.u32 1, %s2466_s10  }
  0x27   : > { %s2345_s15 = smul.u32 1760, %s159_s9  ;;  %s160_s17 = scalar_lea.sflag [#allocation3], %s159_s9 }
  0x29   : > { %s2567_s18 = scalar_lea.vmem [#allocation2], %s2345_s15 }
  0x2a   : > { %2457 = dma.done.wait (%p2541_p7), %s160_s17, 28160  }
  0x2b   : > { %2459 = vsyncadd (%p2541_p7), %s160_s17, 4294939136  ;;  %v242_v0 = vld [vmem:[%s4132_s0 + $0xf8] sm:$0xff]  ;;  %v241_v2 = vld [vmem:[%s4132_s0 + $0xf0] sm:$0xff]  ;;  %vm1047_vm0 = vcmask 654336   ;;  %vm2100_vm1 = vcmask 556032  }
  0x2c   : > { %v306_v1 = vld [vmem:[%s4132_s0 + $0x2f8] sm:$0xff]  ;;  %v550_v3 = vmax.f32 %v242_v0, 0.0  ;;  %v549_v5 = vmax.f32 %v241_v2, 0.0  ;;  %v305_v6 = vld [vmem:[%s4132_s0 + $0x2f0] sm:$0xff]  ;;  %v240_v7 = vld [vmem:[%s4132_s0 + $0xe8] sm:$0xff] }
  0x2d   : > { %v614_v4 = vmax.f32 %v306_v1, 0.0  ;;  %v304_v8 = vld [vmem:[%s4132_s0 + $0x2e8] sm:$0xff]  ;;  %v613_v9 = vmax.f32 %v305_v6, 0.0  ;;  %v548_v10 = vmax.f32 %v240_v7, 0.0  ;;  %v239_v12 = vld [vmem:[%s4132_s0 + $0xe0] sm:$0xff]  ;;  %v238_v14 = vld [vmem:[%s4132_s0 + $0xd8] sm:$0xff] }
  0x2e   : > { %v612_v11 = vmax.f32 %v304_v8, 0.0  ;;  %v303_v13 = vld [vmem:[%s4132_s0 + $0x2e0] sm:$0xff]  ;;  %1114 = vmatprep.subr.mxu0 %v550_v3  ;;  %v547_v15 = vmax.f32 %v239_v12, 0.0  ;;  %v546_v17 = vmax.f32 %v238_v14, 0.0  ;;  %v302_v18 = vld [vmem:[%s4132_s0 + $0x2d8] sm:$0xff]  ;;  %v237_v19 = vld [vmem:[%s4132_s0 + $0xd0] sm:$0xff] }
  0x2f   : > { %1311 = vmatprep.subr.mxu1 %v614_v4  ;;  %v611_v16 = vmax.f32 %v303_v13, 0.0  ;;  %v301_v20 = vld [vmem:[%s4132_s0 + $0x2d0] sm:$0xff]  ;;  %1115 = vmatpush1.msra.mxu0 %v549_v5  ;;  %v610_v21 = vmax.f32 %v302_v18, 0.0  ;;  %v545_v22 = vmax.f32 %v237_v19, 0.0  ;;  %v236_v24 = vld [vmem:[%s4132_s0 + $0xc8] sm:$0xff]  ;;  %v235_v26 = vld [vmem:[%s4132_s0 + $0xc0] sm:$0xff] }
  0x30   : > { %1312 = vmatpush1.msra.mxu1 %v613_v9  ;;  %v609_v23 = vmax.f32 %v301_v20, 0.0  ;;  %v300_v25 = vld [vmem:[%s4132_s0 + $0x2c8] sm:$0xff]  ;;  %1116 = vmatprep.subr.mxu0 %v548_v10  ;;  %v544_v27 = vmax.f32 %v236_v24, 0.0  ;;  %v299_v29 = vld [vmem:[%s4132_s0 + $0x2c0] sm:$0xff]  ;;  %v234_v30 = vld [vmem:[%s4132_s0 + $0xb8] sm:$0xff]  ;;  %v543_v32 = vmax.f32 %v235_v26, 0.0 }
  0x31   : > { %1313 = vmatprep.subr.mxu1 %v612_v11  ;;  %v608_v28 = vmax.f32 %v300_v25, 0.0  ;;  %v298_v31 = vld [vmem:[%s4132_s0 + $0x2b8] sm:$0xff]  ;;  %1117 = vmatpush1.msra.mxu0 %v547_v15  ;;  %v607_v33 = vmax.f32 %v299_v29, 0.0  ;;  %v233_v34 = vld [vmem:[%s4132_s0 + $0xb0] sm:$0xff]  ;;  %v232_v36 = vld [vmem:[%s4132_s0 + $0xa8] sm:$0xff]  ;;  %v542_v37 = vmax.f32 %v234_v30, 0.0 }
  0x32   : > { %1314 = vmatpush1.msra.mxu1 %v611_v16  ;;  %v297_v35 = vld [vmem:[%s4132_s0 + $0x2b0] sm:$0xff]  ;;  %1118 = vmatprep.subr.mxu0 %v546_v17  ;;  %v606_v38 = vmax.f32 %v298_v31, 0.0  ;;  %v296_v39 = vld [vmem:[%s4132_s0 + $0x2a8] sm:$0xff]  ;;  %v231_v40 = vld [vmem:[%s4132_s0 + $0xa0] sm:$0xff]  ;;  %v541_v42 = vmax.f32 %v233_v34, 0.0  ;;  %v540_v46 = vmax.f32 %v232_v36, 0.0 }
  0x33   : > { %1315 = vmatprep.subr.mxu1 %v610_v21  ;;  %v295_v41 = vld [vmem:[%s4132_s0 + $0x2a0] sm:$0xff]  ;;  %1119 = vmatpush1.msra.mxu0 %v545_v22  ;;  %v605_v43 = vmax.f32 %v297_v35, 0.0  ;;  %v230_v44 = vld [vmem:[%s4132_s0 + $0x98] sm:$0xff]  ;;  %v604_v47 = vmax.f32 %v296_v39, 0.0  ;;  %v229_v48 = vld [vmem:[%s4132_s0 + $0x90] sm:$0xff]  ;;  %v539_v50 = vmax.f32 %v231_v40, 0.0 }
  0x34   : > { %1316 = vmatpush1.msra.mxu1 %v609_v23  ;;  %v294_v45 = vld [vmem:[%s4132_s0 + $0x298] sm:$0xff]  ;;  %1120 = vmatprep.subr.mxu0 %v544_v27  ;;  %v293_v49 = vld [vmem:[%s4132_s0 + $0x290] sm:$0xff]  ;;  %v603_v51 = vmax.f32 %v295_v41, 0.0  ;;  %v228_v52 = vld [vmem:[%s4132_s0 + $0x88] sm:$0xff]  ;;  %v538_v54 = vmax.f32 %v230_v44, 0.0  ;;  %v537_v58 = vmax.f32 %v229_v48, 0.0 }
  0x35   : > { %1317 = vmatprep.subr.mxu1 %v608_v28  ;;  %1121 = vmatpush1.msra.mxu0 %v543_v32  ;;  %v292_v53 = vld [vmem:[%s4132_s0 + $0x288] sm:$0xff]  ;;  %v602_v55 = vmax.f32 %v294_v45, 0.0  ;;  %v227_v56 = vld [vmem:[%s4132_s0 + $0x80] sm:$0xff]  ;;  %v601_v59 = vmax.f32 %v293_v49, 0.0  ;;  %v226_v60 = vld [vmem:[%s4132_s0 + $0x78] sm:$0xff]  ;;  %v536_v62 = vmax.f32 %v228_v52, 0.0 }
  0x36   : > { %1318 = vmatpush1.msra.mxu1 %v607_v33  ;;  %1122 = vmatprep.subr.mxu0 %v542_v37  ;;  %v291_v57 = vld [vmem:[%s4132_s0 + $0x280] sm:$0xff]  ;;  %v290_v61 = vld [vmem:[%s4132_s0 + $0x278] sm:$0xff]  ;;  %v600_v63 = vmax.f32 %v292_v53, 0.0  ;;  %v225_v0 = vld [vmem:[%s4132_s0 + $0x70] sm:$0xff]  ;;  %v535_v2 = vmax.f32 %v227_v56, 0.0  ;;  %v534_v6 = vmax.f32 %v226_v60, 0.0 }
  0x37   : > { %1319 = vmatprep.subr.mxu1 %v606_v38  ;;  %1123 = vmatpush1.msra.mxu0 %v541_v42  ;;  %v289_v1 = vld [vmem:[%s4132_s0 + $0x270] sm:$0xff]  ;;  %v599_v3 = vmax.f32 %v291_v57, 0.0  ;;  %v224_v4 = vld [vmem:[%s4132_s0 + $0x68] sm:$0xff]  ;;  %v598_v7 = vmax.f32 %v290_v61, 0.0  ;;  %v223_v8 = vld [vmem:[%s4132_s0 + $0x60] sm:$0xff]  ;;  %v533_v10 = vmax.f32 %v225_v0, 0.0 }
  0x38   : > { %1320 = vmatpush1.msra.mxu1 %v605_v43  ;;  %1124 = vmatprep.subr.mxu0 %v540_v46  ;;  %v288_v5 = vld [vmem:[%s4132_s0 + $0x268] sm:$0xff]  ;;  %v287_v9 = vld [vmem:[%s4132_s0 + $0x260] sm:$0xff]  ;;  %v597_v11 = vmax.f32 %v289_v1, 0.0  ;;  %v222_v12 = vld [vmem:[%s4132_s0 + $0x58] sm:$0xff]  ;;  %v532_v14 = vmax.f32 %v224_v4, 0.0  ;;  %v531_v18 = vmax.f32 %v223_v8, 0.0 }
  0x39   : > { %1321 = vmatprep.subr.mxu1 %v604_v47  ;;  %1125 = vmatpush1.msra.mxu0 %v539_v50  ;;  %v286_v13 = vld [vmem:[%s4132_s0 + $0x258] sm:$0xff]  ;;  %v596_v15 = vmax.f32 %v288_v5, 0.0  ;;  %v221_v16 = vld [vmem:[%s4132_s0 + $0x50] sm:$0xff]  ;;  %v595_v19 = vmax.f32 %v287_v9, 0.0  ;;  %v220_v20 = vld [vmem:[%s4132_s0 + $0x48] sm:$0xff]  ;;  %v530_v22 = vmax.f32 %v222_v12, 0.0 }
  0x3a   : > { %1322 = vmatpush1.msra.mxu1 %v603_v51  ;;  %1126 = vmatprep.subr.mxu0 %v538_v54  ;;  %v285_v17 = vld [vmem:[%s4132_s0 + $0x250] sm:$0xff]  ;;  %v284_v21 = vld [vmem:[%s4132_s0 + $0x248] sm:$0xff]  ;;  %v594_v23 = vmax.f32 %v286_v13, 0.0  ;;  %v219_v24 = vld [vmem:[%s4132_s0 + $0x40] sm:$0xff]  ;;  %v529_v26 = vmax.f32 %v221_v16, 0.0  ;;  %v528_v30 = vmax.f32 %v220_v20, 0.0 }
  0x3b   : > { %1323 = vmatprep.subr.mxu1 %v602_v55  ;;  %1127 = vmatpush1.msra.mxu0 %v537_v58  ;;  %v283_v25 = vld [vmem:[%s4132_s0 + $0x240] sm:$0xff]  ;;  %v593_v27 = vmax.f32 %v285_v17, 0.0  ;;  %v218_v28 = vld [vmem:[%s4132_s0 + $0x38] sm:$0xff]  ;;  %v592_v31 = vmax.f32 %v284_v21, 0.0  ;;  %v217_v32 = vld [vmem:[%s4132_s0 + $0x30] sm:$0xff]  ;;  %v527_v34 = vmax.f32 %v219_v24, 0.0 }
  0x3c   : > { %1324 = vmatpush1.msra.mxu1 %v601_v59  ;;  %1128 = vmatprep.subr.mxu0 %v536_v62  ;;  %v282_v29 = vld [vmem:[%s4132_s0 + $0x238] sm:$0xff]  ;;  %v281_v33 = vld [vmem:[%s4132_s0 + $0x230] sm:$0xff]  ;;  %v591_v35 = vmax.f32 %v283_v25, 0.0  ;;  %v216_v36 = vld [vmem:[%s4132_s0 + $0x28] sm:$0xff]  ;;  %v526_v38 = vmax.f32 %v218_v28, 0.0  ;;  %v525_v42 = vmax.f32 %v217_v32, 0.0 }
  0x3d   : > { %1325 = vmatprep.subr.mxu1 %v600_v63  ;;  %1129 = vmatpush1.msra.mxu0 %v535_v2  ;;  %v280_v37 = vld [vmem:[%s4132_s0 + $0x228] sm:$0xff]  ;;  %v590_v39 = vmax.f32 %v282_v29, 0.0  ;;  %v215_v40 = vld [vmem:[%s4132_s0 + $0x20] sm:$0xff]  ;;  %v589_v43 = vmax.f32 %v281_v33, 0.0  ;;  %v214_v44 = vld [vmem:[%s4132_s0 + $0x18] sm:$0xff]  ;;  %v524_v46 = vmax.f32 %v216_v36, 0.0 }
  0x3e   : > { %1326 = vmatpush1.msra.mxu1 %v599_v3  ;;  %1130 = vmatprep.subr.mxu0 %v534_v6  ;;  %v279_v41 = vld [vmem:[%s4132_s0 + $0x220] sm:$0xff]  ;;  %v278_v45 = vld [vmem:[%s4132_s0 + $0x218] sm:$0xff]  ;;  %v588_v47 = vmax.f32 %v280_v37, 0.0  ;;  %v213_v48 = vld [vmem:[%s4132_s0 + $0x10] sm:$0xff]  ;;  %v523_v50 = vmax.f32 %v215_v40, 0.0  ;;  %v522_v54 = vmax.f32 %v214_v44, 0.0 }
  0x3f   : > { %1327 = vmatprep.subr.mxu1 %v598_v7  ;;  %1131 = vmatpush1.msra.mxu0 %v533_v10  ;;  %v277_v49 = vld [vmem:[%s4132_s0 + $0x210] sm:$0xff]  ;;  %v587_v51 = vmax.f32 %v279_v41, 0.0  ;;  %v212_v52 = vld [vmem:[%s4132_s0 + $0x8] sm:$0xff]  ;;  %v586_v55 = vmax.f32 %v278_v45, 0.0  ;;  %v211_v56 = vld [vmem:[%s4132_s0] sm:$0xff]  ;;  %v521_v58 = vmax.f32 %v213_v48, 0.0 }
  0x40   : > { %1328 = vmatpush1.msra.mxu1 %v597_v11  ;;  %1132 = vmatprep.subr.mxu0 %v532_v14  ;;  %v276_v53 = vld [vmem:[%s4132_s0 + $0x208] sm:$0xff]  ;;  %v275_v57 = vld [vmem:[%s4132_s0 + $0x200] sm:$0xff]  ;;  %v585_v59 = vmax.f32 %v277_v49, 0.0  ;;  %v274_v60 = vld [vmem:[%s4132_s0 + $0x1f8] sm:$0xff]  ;;  %v520_v62 = vmax.f32 %v212_v52, 0.0  ;;  %v519_v2 = vmax.f32 %v211_v56, 0.0 }
  0x41   : > { %1329 = vmatprep.subr.mxu1 %v596_v15  ;;  %1133 = vmatpush1.msra.mxu0 %v531_v18  ;;  %v338_v61 = vld [vmem:[%s4132_s0 + $0x3f8] sm:$0xff]  ;;  %v584_v63 = vmax.f32 %v276_v53, 0.0  ;;  %v273_v0 = vld [vmem:[%s4132_s0 + $0x1f0] sm:$0xff]  ;;  %v583_v3 = vmax.f32 %v275_v57, 0.0  ;;  %v272_v4 = vld [vmem:[%s4132_s0 + $0x1e8] sm:$0xff]  ;;  %v582_v6 = vmax.f32 %v274_v60, 0.0 }
  0x42   : > { %1330 = vmatpush1.msra.mxu1 %v595_v19  ;;  %1134 = vmatprep.subr.mxu0 %v530_v22  ;;  %v337_v1 = vld [vmem:[%s4132_s0 + $0x3f0] sm:$0xff]  ;;  %v336_v5 = vld [vmem:[%s4132_s0 + $0x3e8] sm:$0xff]  ;;  %v646_v7 = vmax.f32 %v338_v61, 0.0  ;;  %v271_v8 = vld [vmem:[%s4132_s0 + $0x1e0] sm:$0xff]  ;;  %v581_v10 = vmax.f32 %v273_v0, 0.0  ;;  %v580_v14 = vmax.f32 %v272_v4, 0.0 }
  0x43   : > { %1331 = vmatprep.subr.mxu1 %v594_v23  ;;  %1135 = vmatpush1.msra.mxu0 %v529_v26  ;;  %v335_v9 = vld [vmem:[%s4132_s0 + $0x3e0] sm:$0xff]  ;;  %v645_v11 = vmax.f32 %v337_v1, 0.0  ;;  %v270_v12 = vld [vmem:[%s4132_s0 + $0x1d8] sm:$0xff]  ;;  %v644_v15 = vmax.f32 %v336_v5, 0.0  ;;  %v269_v16 = vld [vmem:[%s4132_s0 + $0x1d0] sm:$0xff]  ;;  %v579_v18 = vmax.f32 %v271_v8, 0.0 }
  0x44   : > { %1332 = vmatpush1.msra.mxu1 %v593_v27  ;;  %1136 = vmatprep.subr.mxu0 %v528_v30  ;;  %v334_v13 = vld [vmem:[%s4132_s0 + $0x3d8] sm:$0xff]  ;;  %v333_v17 = vld [vmem:[%s4132_s0 + $0x3d0] sm:$0xff]  ;;  %v643_v19 = vmax.f32 %v335_v9, 0.0  ;;  %v268_v20 = vld [vmem:[%s4132_s0 + $0x1c8] sm:$0xff]  ;;  %v578_v22 = vmax.f32 %v270_v12, 0.0  ;;  %v577_v26 = vmax.f32 %v269_v16, 0.0 }
  0x45   : > { %1333 = vmatprep.subr.mxu1 %v592_v31  ;;  %1137 = vmatpush1.msra.mxu0 %v527_v34  ;;  %v332_v21 = vld [vmem:[%s4132_s0 + $0x3c8] sm:$0xff]  ;;  %v642_v23 = vmax.f32 %v334_v13, 0.0  ;;  %v267_v24 = vld [vmem:[%s4132_s0 + $0x1c0] sm:$0xff]  ;;  %v641_v27 = vmax.f32 %v333_v17, 0.0  ;;  %v266_v28 = vld [vmem:[%s4132_s0 + $0x1b8] sm:$0xff]  ;;  %v576_v30 = vmax.f32 %v268_v20, 0.0 }
  0x46   : > { %1334 = vmatpush1.msra.mxu1 %v591_v35  ;;  %1138 = vmatprep.subr.mxu0 %v526_v38  ;;  %v331_v25 = vld [vmem:[%s4132_s0 + $0x3c0] sm:$0xff]  ;;  %v330_v29 = vld [vmem:[%s4132_s0 + $0x3b8] sm:$0xff]  ;;  %v640_v31 = vmax.f32 %v332_v21, 0.0  ;;  %v265_v32 = vld [vmem:[%s4132_s0 + $0x1b0] sm:$0xff]  ;;  %v575_v34 = vmax.f32 %v267_v24, 0.0  ;;  %v574_v38 = vmax.f32 %v266_v28, 0.0 }
  0x47   : > { %1335 = vmatprep.subr.mxu1 %v590_v39  ;;  %1139 = vmatpush1.msra.mxu0 %v525_v42  ;;  %v329_v33 = vld [vmem:[%s4132_s0 + $0x3b0] sm:$0xff]  ;;  %v639_v35 = vmax.f32 %v331_v25, 0.0  ;;  %v264_v36 = vld [vmem:[%s4132_s0 + $0x1a8] sm:$0xff]  ;;  %v638_v39 = vmax.f32 %v330_v29, 0.0  ;;  %v263_v40 = vld [vmem:[%s4132_s0 + $0x1a0] sm:$0xff]  ;;  %v573_v42 = vmax.f32 %v265_v32, 0.0 }
  0x48   : > { %1336 = vmatpush1.msra.mxu1 %v589_v43  ;;  %1140 = vmatprep.subr.mxu0 %v524_v46  ;;  %v328_v37 = vld [vmem:[%s4132_s0 + $0x3a8] sm:$0xff]  ;;  %v327_v41 = vld [vmem:[%s4132_s0 + $0x3a0] sm:$0xff]  ;;  %v637_v43 = vmax.f32 %v329_v33, 0.0  ;;  %v262_v44 = vld [vmem:[%s4132_s0 + $0x198] sm:$0xff]  ;;  %v572_v46 = vmax.f32 %v264_v36, 0.0 }
  0x49   : > { %1337 = vmatprep.subr.mxu1 %v588_v47  ;;  %1141 = vmatpush1.msra.mxu0 %v523_v50  ;;  %v326_v45 = vld [vmem:[%s4132_s0 + $0x398] sm:$0xff]  ;;  %v636_v47 = vmax.f32 %v328_v37, 0.0  ;;  %v261_v48 = vld [vmem:[%s4132_s0 + $0x190] sm:$0xff]  ;;  %v571_v50 = vmax.f32 %v263_v40, 0.0  ;;  %v260_v52 = vld [vmem:[%s4132_s0 + $0x188] sm:$0xff] }
  0x4a   : > { %1338 = vmatpush1.msra.mxu1 %v587_v51  ;;  %1142 = vmatprep.subr.mxu0 %v522_v54  ;;  %v325_v49 = vld [vmem:[%s4132_s0 + $0x390] sm:$0xff]  ;;  %v635_v51 = vmax.f32 %v327_v41, 0.0  ;;  %v324_v53 = vld [vmem:[%s4132_s0 + $0x388] sm:$0xff]  ;;  %v570_v54 = vmax.f32 %v262_v44, 0.0  ;;  %v259_v56 = vld [vmem:[%s4132_s0 + $0x180] sm:$0xff] }
  0x4b   : > { %1339 = vmatprep.subr.mxu1 %v586_v55  ;;  %1143 = vmatpush1.msra.mxu0 %v521_v58  ;;  %v634_v55 = vmax.f32 %v326_v45, 0.0  ;;  %v323_v57 = vld [vmem:[%s4132_s0 + $0x380] sm:$0xff]  ;;  %v569_v58 = vmax.f32 %v261_v48, 0.0  ;;  %v258_v60 = vld [vmem:[%s4132_s0 + $0x178] sm:$0xff]  ;;  %v257_v0 = vld [vmem:[%s4132_s0 + $0x170] sm:$0xff] }
  0x4c   : > { %1340 = vmatpush1.msra.mxu1 %v585_v59  ;;  %1144 = vmatprep.subr.mxu0 %v520_v62  ;;  %v633_v59 = vmax.f32 %v325_v49, 0.0  ;;  %v322_v61 = vld [vmem:[%s4132_s0 + $0x378] sm:$0xff]  ;;  %v568_v62 = vmax.f32 %v260_v52, 0.0  ;;  %v321_v1 = vld [vmem:[%s4132_s0 + $0x370] sm:$0xff]  ;;  %v256_v4 = vld [vmem:[%s4132_s0 + $0x168] sm:$0xff] }
  0x4d   : > { %1341 = vmatprep.subr.mxu1 %v584_v63  ;;  %1145 = vmatpush1.msra.mxu0 %v519_v2  ;;  %v632_v63 = vmax.f32 %v324_v53, 0.0  ;;  %v567_v2 = vmax.f32 %v259_v56, 0.0  ;;  %v320_v5 = vld [vmem:[%s4132_s0 + $0x368] sm:$0xff]  ;;  %v255_v8 = vld [vmem:[%s4132_s0 + $0x160] sm:$0xff]  ;;  %v254_v12 = vld [vmem:[%s4132_s0 + $0x158] sm:$0xff] }
  0x4e   : > { %1342 = vmatpush1.msra.mxu1 %v583_v3  ;;  %1146 = vmatprep.subr.mxu0 %v582_v6  ;;  %v631_v3 = vmax.f32 %v323_v57, 0.0  ;;  %v566_v6 = vmax.f32 %v258_v60, 0.0  ;;  %v319_v9 = vld [vmem:[%s4132_s0 + $0x360] sm:$0xff]  ;;  %v318_v13 = vld [vmem:[%s4132_s0 + $0x358] sm:$0xff]  ;;  %v253_v16 = vld [vmem:[%s4132_s0 + $0x150] sm:$0xff] }
  0x4f   : > { %1343 = vmatprep.subr.mxu1 %v646_v7  ;;  %1147 = vmatpush2.msra.mxu0 %v581_v10  ;;  %v630_v7 = vmax.f32 %v322_v61, 0.0  ;;  %v565_v10 = vmax.f32 %v257_v0, 0.0  ;;  %v317_v17 = vld [vmem:[%s4132_s0 + $0x350] sm:$0xff]  ;;  %v252_v20 = vld [vmem:[%s4132_s0 + $0x148] sm:$0xff]  ;;  %v251_v24 = vld [vmem:[%s4132_s0 + $0x140] sm:$0xff] }
  0x50   : > { %1344 = vmatpush2.msra.mxu1 %v645_v11  ;;  %1148 = vmatprep.subr.mxu0 %v580_v14  ;;  %v629_v11 = vmax.f32 %v321_v1, 0.0  ;;  %v564_v14 = vmax.f32 %v256_v4, 0.0  ;;  %v316_v21 = vld [vmem:[%s4132_s0 + $0x348] sm:$0xff]  ;;  %v315_v25 = vld [vmem:[%s4132_s0 + $0x340] sm:$0xff]  ;;  %v250_v28 = vld [vmem:[%s4132_s0 + $0x138] sm:$0xff] }
  0x51   : > { %1345 = vmatprep.subr.mxu1 %v644_v15  ;;  %1149 = vmatpush2.msra.mxu0 %v579_v18  ;;  %v628_v15 = vmax.f32 %v320_v5, 0.0  ;;  %v563_v18 = vmax.f32 %v255_v8, 0.0  ;;  %v314_v29 = vld [vmem:[%s4132_s0 + $0x338] sm:$0xff]  ;;  %v249_v32 = vld [vmem:[%s4132_s0 + $0x130] sm:$0xff]  ;;  %v248_v36 = vld [vmem:[%s4132_s0 + $0x128] sm:$0xff] }
  0x52   : > { %1346 = vmatpush2.msra.mxu1 %v643_v19  ;;  %1150 = vmatprep.subr.mxu0 %v578_v22  ;;  %v627_v19 = vmax.f32 %v319_v9, 0.0  ;;  %v562_v22 = vmax.f32 %v254_v12, 0.0  ;;  %v313_v33 = vld [vmem:[%s4132_s0 + $0x330] sm:$0xff]  ;;  %v312_v37 = vld [vmem:[%s4132_s0 + $0x328] sm:$0xff]  ;;  %v247_v40 = vld [vmem:[%s4132_s0 + $0x120] sm:$0xff] }
  0x53   : > { %1347 = vmatprep.subr.mxu1 %v642_v23  ;;  %1151 = vmatpush2.msra.mxu0 %v577_v26  ;;  %v626_v23 = vmax.f32 %v318_v13, 0.0  ;;  %v561_v26 = vmax.f32 %v253_v16, 0.0  ;;  %v311_v41 = vld [vmem:[%s4132_s0 + $0x320] sm:$0xff]  ;;  %v246_v44 = vld [vmem:[%s4132_s0 + $0x118] sm:$0xff]  ;;  %v245_v48 = vld [vmem:[%s4132_s0 + $0x110] sm:$0xff] }
  0x54   : > { %1348 = vmatpush2.msra.mxu1 %v641_v27  ;;  %1152 = vmatprep.subr.mxu0 %v576_v30  ;;  %v625_v27 = vmax.f32 %v317_v17, 0.0  ;;  %v560_v30 = vmax.f32 %v252_v20, 0.0  ;;  %v310_v45 = vld [vmem:[%s4132_s0 + $0x318] sm:$0xff]  ;;  %v309_v49 = vld [vmem:[%s4132_s0 + $0x310] sm:$0xff]  ;;  %v244_v52 = vld [vmem:[%s4132_s0 + $0x108] sm:$0xff]  ;;  %v553_v57 = vmax.f32 %v245_v48, 0.0 }
  0x55   : > { %1349 = vmatprep.subr.mxu1 %v640_v31  ;;  %1153 = vmatpush2.msra.mxu0 %v575_v34  ;;  %v624_v31 = vmax.f32 %v316_v21, 0.0  ;;  %v559_v34 = vmax.f32 %v251_v24, 0.0  ;;  %v308_v53 = vld [vmem:[%s4132_s0 + $0x308] sm:$0xff]  ;;  %v243_v56 = vld [vmem:[%s4132_s0 + $0x100] sm:$0xff]  ;;  %v552_v60 = vmax.f32 %v244_v52, 0.0  ;;  %v434_v0 = vld [vmem:[%s4132_s0 + $0x6f8] sm:$0xff] }
  0x56   : > { %1350 = vmatpush2.msra.mxu1 %v639_v35  ;;  %1154 = vmatprep.subr.mxu0 %v574_v38  ;;  %v623_v35 = vmax.f32 %v315_v25, 0.0  ;;  %v558_v38 = vmax.f32 %v250_v28, 0.0  ;;  %v616_v61 = vmax.f32 %v308_v53, 0.0  ;;  %v828_v1 = vld [vmem:[%s2567_s18 + $0x8] sm:$0xff]  ;;  %v433_v4 = vld [vmem:[%s4132_s0 + $0x6f0] sm:$0xff]  ;;  %v830_v5 = vld [vmem:[%s2567_s18 + $0x18] sm:$0xff] }
  0x57   : > { %1351 = vmatprep.subr.mxu1 %v638_v39  ;;  %1155 = vmatpush2.msra.mxu0 %v573_v42  ;;  %v622_v39 = vmax.f32 %v314_v29, 0.0  ;;  %v557_v42 = vmax.f32 %v249_v32, 0.0  ;;  %v742_v9 = vmax.f32 %v434_v0, 0.0  ;;  %v741_v13 = vmax.f32 %v433_v4, 0.0  ;;  %v431_v16 = vld [vmem:[%s4132_s0 + $0x6e0] sm:$0xff]  ;;  %v840_v17 = vld [vmem:[%s2567_s18 + $0x68] sm:$0xff] }
  0x58   : > { %1352 = vmatpush2.msra.mxu1 %v637_v43  ;;  %1156 = vmatprep.subr.mxu0 %v572_v46  ;;  %v621_v43 = vmax.f32 %v313_v33, 0.0  ;;  %v556_v46 = vmax.f32 %v248_v36, 0.0  ;;  %v366_v20 = vld [vmem:[%s4132_s0 + $0x4d8] sm:$0xff]  ;;  %v739_v25 = vmax.f32 %v431_v16, 0.0  ;;  %v428_v32 = vld [vmem:[%s4132_s0 + $0x6c8] sm:$0xff]  ;;  %v363_v36 = vld [vmem:[%s4132_s0 + $0x4c0] sm:$0xff] }
  0x59   : > { %1353 = vmatprep.subr.mxu1 %v636_v47  ;;  %1157 = vmatpush2.msra.mxu0 %v571_v50  ;;  %v620_v47 = vmax.f32 %v312_v37, 0.0  ;;  %v555_v50 = vmax.f32 %v247_v40, 0.0  ;;  %v430_v21 = vld [vmem:[%s4132_s0 + $0x6d8] sm:$0xff]  ;;  %v674_v28 = vmax.f32 %v366_v20, 0.0  ;;  %v427_v37 = vld [vmem:[%s4132_s0 + $0x6c0] sm:$0xff]  ;;  %v425_v48 = vld [vmem:[%s4132_s0 + $0x6b0] sm:$0xff] }
  0x5a   : > { %1354 = vmatpush2.msra.mxu1 %v635_v51  ;;  %1158 = vmatprep.subr.mxu0 %v570_v54  ;;  %v619_v51 = vmax.f32 %v311_v41, 0.0  ;;  %v554_v54 = vmax.f32 %v246_v44, 0.0  ;;  %v738_v29 = vmax.f32 %v430_v21, 0.0  ;;  %v850_v33 = vld [vmem:[%s2567_s18 + $0xb8] sm:$0xff]  ;;  %v736_v41 = vmax.f32 %v428_v32, 0.0  ;;  %v360_v52 = vld [vmem:[%s4132_s0 + $0x4a8] sm:$0xff] }
  0x5b   : > { %1355 = vmatprep.subr.mxu1 %v634_v55  ;;  %1159 = vmatpush2.msra.mxu0 %v569_v58  ;;  %v618_v55 = vmax.f32 %v310_v45, 0.0  ;;  %v617_v58 = vmax.f32 %v309_v49, 0.0  ;;  %v671_v44 = vmax.f32 %v363_v36, 0.0  ;;  %v735_v45 = vmax.f32 %v427_v37, 0.0  ;;  %v860_v49 = vld [vmem:[%s2567_s18 + $0x108] sm:$0xff]  ;;  %v422_v0 = vld [vmem:[%s4132_s0 + $0x698] sm:$0xff] }
  0x5c   : > { %1356 = vmatpush2.msra.mxu1 %v633_v59  ;;  %1160 = vmatprep.subr.mxu0 %v568_v62  ;;  %v307_v59 = vld [vmem:[%s4132_s0 + $0x300] sm:$0xff]  ;;  %v551_v62 = vmax.f32 %v243_v56, 0.0  ;;  %v424_v53 = vld [vmem:[%s4132_s0 + $0x6a8] sm:$0xff]  ;;  %v357_v4 = vld [vmem:[%s4132_s0 + $0x490] sm:$0xff] }
  0x5d   : > { %1357 = vmatprep.subr.mxu1 %v632_v63  ;;  %1161 = vmatpush2.msra.mxu0 %v567_v2  ;;  %v370_v63 = vld [vmem:[%s4132_s0 + $0x4f8] sm:$0xff]  ;;  %v615_v2 = vmax.f32 %v307_v59, 0.0  ;;  %v423_v59 = vld [vmem:[%s4132_s0 + $0x6a0] sm:$0xff]  ;;  %v877_v20 = vld [vmem:[%s2567_s18 + $0x190] sm:$0xff] }
  0x5e   : > { %1358 = vmatpush2.msra.mxu1 %v631_v3  ;;  %1162 = vmatprep.subr.mxu0 %v566_v6  ;;  %v369_v3 = vld [vmem:[%s4132_s0 + $0x4f0] sm:$0xff]  ;;  %v827_v6 = vld [vmem:[%s2567_s18] sm:$0xff]  ;;  %v678_v8 = vmax.f32 %v370_v63, 0.0  ;;  %v358_v63 = vld [vmem:[%s4132_s0 + $0x498] sm:$0xff] }
  0x5f   : > { %1359 = vmatprep.subr.mxu1 %v630_v7  ;;  %1163 = vmatpush2.msra.mxu0 %v565_v10  ;;  %v829_v7 = vld [vmem:[%s2567_s18 + $0x10] sm:$0xff]  ;;  %v368_v10 = vld [vmem:[%s4132_s0 + $0x4e8] sm:$0xff]  ;;  %v677_v12 = vmax.f32 %v369_v3, 0.0  ;;  %v731_v3 = vmax.f32 %v423_v59, 0.0  ;;  %v419_v16 = vld [vmem:[%s4132_s0 + $0x680] sm:$0xff] }
  0x60   : > { %1360 = vmatpush2.msra.mxu1 %v629_v11  ;;  %1164 = vmatprep.subr.mxu0 %v564_v14  ;;  %v432_v11 = vld [vmem:[%s4132_s0 + $0x6e8] sm:$0xff]  ;;  %v838_v14 = vld [vmem:[%s2567_s18 + $0x58] sm:$0xff]  ;;  %v879_v21 = vld [vmem:[%s2567_s18 + $0x1a0] sm:$0xff] }
  0x61   : > { %1361 = vmatprep.subr.mxu1 %v628_v15  ;;  %1165 = vmatpush2.msra.mxu0 %v563_v18  ;;  %v367_v15 = vld [vmem:[%s4132_s0 + $0x4e0] sm:$0xff]  ;;  %v676_v18 = vmax.f32 %v368_v10, 0.0  ;;  %v665_v10 = vmax.f32 %v357_v4, 0.0  ;;  %v416_v32 = vld [vmem:[%s4132_s0 + $0x668] sm:$0xff] }
  0x62   : > { %1362 = vmatpush2.msra.mxu1 %v627_v19  ;;  %1166 = vmatprep.subr.mxu0 %v562_v22  ;;  %v740_v19 = vmax.f32 %v432_v11, 0.0  ;;  %v837_v22 = vld [vmem:[%s2567_s18 + $0x50] sm:$0xff]  ;;  %v675_v24 = vmax.f32 %v367_v15, 0.0  ;;  %v355_v15 = vld [vmem:[%s4132_s0 + $0x480] sm:$0xff] }
  0x63   : > { %1363 = vmatprep.subr.mxu1 %v626_v23  ;;  %1167 = vmatpush2.msra.mxu0 %v561_v26  ;;  %v839_v23 = vld [vmem:[%s2567_s18 + $0x60] sm:$0xff]  ;;  %v365_v26 = vld [vmem:[%s4132_s0 + $0x4d0] sm:$0xff] }
  0x64   : > { %1364 = vmatpush2.msra.mxu1 %v625_v27  ;;  %1168 = vmatprep.subr.mxu0 %v560_v30  ;;  %v429_v27 = vld [vmem:[%s4132_s0 + $0x6d0] sm:$0xff]  ;;  %v848_v30 = vld [vmem:[%s2567_s18 + $0xa8] sm:$0xff]  ;;  %v351_v36 = vld [vmem:[%s4132_s0 + $0x460] sm:$0xff] }
  0x65   : > { %1365 = vmatprep.subr.mxu1 %v624_v31  ;;  %1169 = vmatpush2.msra.mxu0 %v559_v34  ;;  %v364_v31 = vld [vmem:[%s4132_s0 + $0x4c8] sm:$0xff]  ;;  %v673_v34 = vmax.f32 %v365_v26, 0.0  ;;  %v353_v26 = vld [vmem:[%s4132_s0 + $0x470] sm:$0xff]  ;;  %v415_v37 = vld [vmem:[%s4132_s0 + $0x660] sm:$0xff] }
  0x66   : > { %1366 = vmatpush2.msra.mxu1 %v623_v35  ;;  %1170 = vmatprep.subr.mxu0 %v558_v38  ;;  %v737_v35 = vmax.f32 %v429_v27, 0.0  ;;  %v847_v38 = vld [vmem:[%s2567_s18 + $0xa0] sm:$0xff]  ;;  %v672_v40 = vmax.f32 %v364_v31, 0.0  ;;  %v417_v27 = vld [vmem:[%s4132_s0 + $0x670] sm:$0xff]  ;;  %v352_v31 = vld [vmem:[%s4132_s0 + $0x468] sm:$0xff] }
  0x67   : > { %1367 = vmatprep.subr.mxu1 %v622_v39  ;;  %1171 = vmatpush2.msra.mxu0 %v557_v42  ;;  %v849_v39 = vld [vmem:[%s2567_s18 + $0xb0] sm:$0xff]  ;;  %v362_v42 = vld [vmem:[%s4132_s0 + $0x4b8] sm:$0xff]  ;;  %v347_v59 = vld [vmem:[%s4132_s0 + $0x440] sm:$0xff] }
  0x68   : > { %1368 = vmatpush2.msra.mxu1 %v621_v43  ;;  %1172 = vmatprep.subr.mxu0 %v556_v46  ;;  %v426_v43 = vld [vmem:[%s4132_s0 + $0x6b8] sm:$0xff]  ;;  %v907_v4 = vld [vmem:[%s2567_s18 + $0x280] sm:$0xff] }
  0x69   : > { %1369 = vmatprep.subr.mxu1 %v620_v47  ;;  %1173 = vmatpush2.msra.mxu0 %v555_v50  ;;  %v858_v46 = vld [vmem:[%s2567_s18 + $0xf8] sm:$0xff]  ;;  %v361_v47 = vld [vmem:[%s4132_s0 + $0x4b0] sm:$0xff]  ;;  %v670_v50 = vmax.f32 %v362_v42, 0.0  ;;  %v659_v42 = vmax.f32 %v351_v36, 0.0 }
  0x6a   : > { %1370 = vmatpush2.msra.mxu1 %v619_v51  ;;  %1174 = vmatprep.subr.mxu0 %v554_v54  ;;  %v734_v51 = vmax.f32 %v426_v43, 0.0  ;;  %v857_v54 = vld [vmem:[%s2567_s18 + $0xf0] sm:$0xff]  ;;  %v669_v56 = vmax.f32 %v361_v47, 0.0  ;;  %v723_v43 = vmax.f32 %v415_v37, 0.0 }
  0x6b   : > { %1371 = vmatprep.subr.mxu1 %v618_v55  ;;  %1175 = vmatpush2.msra.mxu0 %v553_v57  ;;  %v859_v55 = vld [vmem:[%s2567_s18 + $0x100] sm:$0xff]  ;;  %v733_v57 = vmax.f32 %v425_v48, 0.0  ;;  %v413_v47 = vld [vmem:[%s4132_s0 + $0x650] sm:$0xff]  ;;  %v898_v48 = vld [vmem:[%s2567_s18 + $0x238] sm:$0xff] }
  0x6c   : > { %1372 = vmatpush2.msra.mxu1 %v617_v58  ;;  %1176 = vmatprep.subr.mxu0 %v552_v60  ;;  %v359_v58 = vld [vmem:[%s4132_s0 + $0x4a0] sm:$0xff]  ;;  %v668_v60 = vmax.f32 %v360_v52, 0.0 }
  0x6d   : > { %1373 = vmatprep.subr.mxu1 %v616_v61  ;;  %1177 = vmatpush2.msra.mxu0 %v551_v62  ;;  %v732_v61 = vmax.f32 %v424_v53, 0.0  ;;  %v868_v62 = vld [vmem:[%s2567_s18 + $0x148] sm:$0xff] }
  0x6e   : > { %1178 = vmatprep.mubr.f32.mxu0 %v828_v1  ;;  %1374 = vmatpush2.msra.mxu1 %v615_v2  ;;  %v870_v1 = vld [vmem:[%s2567_s18 + $0x158] sm:$0xff]  ;;  %v667_v2 = vmax.f32 %v359_v58, 0.0  ;;  %v908_v58 = vld [vmem:[%s2567_s18 + $0x288] sm:$0xff] }
  0x6f   : > { %1375 = vmatprep.mubr.f32.mxu1 %v830_v5  ;;  %1179 = vmatmul.mubr.f32.vlgmr.msra.gmra.mxu0 %v827_v6  ;;  %v421_v5 = vld [vmem:[%s4132_s0 + $0x690] sm:$0xff]  ;;  %v867_v6 = vld [vmem:[%s2567_s18 + $0x140] sm:$0xff] }
  0x70   : > { %1376 = vmatmul.mubr.f32.vlgmr.msra.gmra.mxu1 %v829_v7  ;;  %1508 = vmatprep.subr.mxu0 %v678_v8  ;;  %v869_v7 = vld [vmem:[%s2567_s18 + $0x150] sm:$0xff]  ;;  %v666_v8 = vmax.f32 %v358_v63, 0.0  ;;  %v729_v11 = vmax.f32 %v421_v5, 0.0 }
  0x71   : > { %1705 = vmatprep.subr.mxu1 %v742_v9  ;;  %1509 = vmatpush1.msra.mxu0 %v677_v12  ;;  %v730_v9 = vmax.f32 %v422_v0, 0.0  ;;  %v356_v12 = vld [vmem:[%s4132_s0 + $0x488] sm:$0xff]  ;;  %v346_v0 = vld [vmem:[%s4132_s0 + $0x438] sm:$0xff]  ;;  %v909_v5 = vld [vmem:[%s2567_s18 + $0x290] sm:$0xff] }
  0x72   : > { %1706 = vmatpush1.msra.mxu1 %v741_v13  ;;  %1184 = vmatprep.mubr.f32.mxu0 %v838_v14  ;;  %v420_v13 = vld [vmem:[%s4132_s0 + $0x688] sm:$0xff]  ;;  %v878_v14 = vld [vmem:[%s2567_s18 + $0x198] sm:$0xff] }
  0x73   : > { %1381 = vmatprep.mubr.f32.mxu1 %v840_v17  ;;  %1510 = vmatprep.subr.mxu0 %v676_v18  ;;  %v880_v17 = vld [vmem:[%s2567_s18 + $0x1a8] sm:$0xff]  ;;  %v354_v18 = vld [vmem:[%s4132_s0 + $0x478] sm:$0xff] }
  0x74   : > { %1707 = vmatprep.subr.mxu1 %v740_v19  ;;  %1185 = vmatmul.mubr.f32.gmra.mxu0 %v837_v22  ;;  %v418_v19 = vld [vmem:[%s4132_s0 + $0x678] sm:$0xff]  ;;  %v664_v22 = vmax.f32 %v356_v12, 0.0  ;;  %v344_v12 = vld [vmem:[%s4132_s0 + $0x428] sm:$0xff] }
  0x75   : > { %1382 = vmatmul.mubr.f32.gmra.mxu1 %v839_v23  ;;  %1511 = vmatpush1.msra.mxu0 %v675_v24  ;;  %v728_v23 = vmax.f32 %v420_v13, 0.0  ;;  %v663_v24 = vmax.f32 %v355_v15, 0.0  ;;  %v408_v13 = vld [vmem:[%s4132_s0 + $0x628] sm:$0xff]  ;;  %v407_v15 = vld [vmem:[%s4132_s0 + $0x620] sm:$0xff] }
  0x76   : > { %1708 = vmatpush1.msra.mxu1 %v739_v25  ;;  %1512 = vmatprep.subr.mxu0 %v674_v28  ;;  %v727_v25 = vmax.f32 %v419_v16, 0.0  ;;  %v662_v28 = vmax.f32 %v354_v18, 0.0  ;;  %v918_v16 = vld [vmem:[%s2567_s18 + $0x2d8] sm:$0xff]  ;;  %v917_v18 = vld [vmem:[%s2567_s18 + $0x2d0] sm:$0xff] }
  0x77   : > { %1709 = vmatprep.subr.mxu1 %v738_v29  ;;  %1190 = vmatprep.mubr.f32.mxu0 %v848_v30  ;;  %v726_v29 = vmax.f32 %v418_v19, 0.0  ;;  %v888_v30 = vld [vmem:[%s2567_s18 + $0x1e8] sm:$0xff]  ;;  %v919_v19 = vld [vmem:[%s2567_s18 + $0x2e0] sm:$0xff] }
  0x78   : > { %1387 = vmatprep.mubr.f32.mxu1 %v850_v33  ;;  %1513 = vmatpush1.msra.mxu0 %v673_v34  ;;  %v890_v33 = vld [vmem:[%s2567_s18 + $0x1f8] sm:$0xff]  ;;  %v661_v34 = vmax.f32 %v353_v26, 0.0  ;;  %v928_v26 = vld [vmem:[%s2567_s18 + $0x328] sm:$0xff] }
  0x79   : > { %1710 = vmatpush1.msra.mxu1 %v737_v35  ;;  %1191 = vmatmul.mubr.f32.gmra.mxu0 %v847_v38  ;;  %v725_v35 = vmax.f32 %v417_v27, 0.0  ;;  %v887_v38 = vld [vmem:[%s2567_s18 + $0x1e0] sm:$0xff]  ;;  %v341_v27 = vld [vmem:[%s4132_s0 + $0x410] sm:$0xff] }
  0x7a   : > { %1388 = vmatmul.mubr.f32.gmra.mxu1 %v849_v39  ;;  %1514 = vmatprep.subr.mxu0 %v672_v40  ;;  %v889_v39 = vld [vmem:[%s2567_s18 + $0x1f0] sm:$0xff]  ;;  %v660_v40 = vmax.f32 %v352_v31, 0.0  ;;  %v649_v36 = vmax.f32 %v341_v27, 0.0 }
  0x7b   : > { %1711 = vmatprep.subr.mxu1 %v736_v41  ;;  %1515 = vmatpush1.msra.mxu0 %v671_v44  ;;  %v724_v41 = vmax.f32 %v416_v32, 0.0  ;;  %v350_v44 = vld [vmem:[%s4132_s0 + $0x458] sm:$0xff]  ;;  %v340_v32 = vld [vmem:[%s4132_s0 + $0x408] sm:$0xff]  ;;  %v393_v27 = vld [vmem:[%s4132_s0 + $0x5b0] sm:$0xff] }
  0x7c   : > { %1712 = vmatpush1.msra.mxu1 %v735_v45  ;;  %1196 = vmatprep.mubr.f32.mxu0 %v858_v46  ;;  %v414_v45 = vld [vmem:[%s4132_s0 + $0x658] sm:$0xff]  ;;  %v349_v46 = vld [vmem:[%s4132_s0 + $0x450] sm:$0xff]  ;;  %v658_v52 = vmax.f32 %v350_v44, 0.0 }
  0x7d   : > { %1393 = vmatprep.mubr.f32.mxu1 %v860_v49  ;;  %1516 = vmatprep.subr.mxu0 %v670_v50  ;;  %v900_v49 = vld [vmem:[%s2567_s18 + $0x248] sm:$0xff]  ;;  %v897_v50 = vld [vmem:[%s2567_s18 + $0x230] sm:$0xff]  ;;  %v722_v53 = vmax.f32 %v414_v45, 0.0  ;;  %v466_v44 = vld [vmem:[%s4132_s0 + $0x7f8] sm:$0xff] }
  0x7e   : > { %1713 = vmatprep.subr.mxu1 %v734_v51  ;;  %1197 = vmatmul.mubr.f32.gmra.mxu0 %v857_v54  ;;  %v899_v51 = vld [vmem:[%s2567_s18 + $0x240] sm:$0xff]  ;;  %v348_v54 = vld [vmem:[%s4132_s0 + $0x448] sm:$0xff] }
  0x7f   : > { %1394 = vmatmul.mubr.f32.gmra.mxu1 %v859_v55  ;;  %1517 = vmatpush1.msra.mxu0 %v669_v56  ;;  %v412_v55 = vld [vmem:[%s4132_s0 + $0x648] sm:$0xff]  ;;  %v657_v56 = vmax.f32 %v349_v46, 0.0 }
  0x80   : > { %1714 = vmatpush1.msra.mxu1 %v733_v57  ;;  %1518 = vmatprep.subr.mxu0 %v668_v60  ;;  %v721_v57 = vmax.f32 %v413_v47, 0.0  ;;  %v411_v60 = vld [vmem:[%s4132_s0 + $0x640] sm:$0xff]  ;;  %v720_v63 = vmax.f32 %v412_v55, 0.0  ;;  %v940_v45 = vld [vmem:[%s2567_s18 + $0x388] sm:$0xff] }
  0x81   : > { %1715 = vmatprep.subr.mxu1 %v732_v61  ;;  %1202 = vmatprep.mubr.f32.mxu0 %v868_v62  ;;  %v910_v61 = vld [vmem:[%s2567_s18 + $0x298] sm:$0xff]  ;;  %v656_v62 = vmax.f32 %v348_v54, 0.0  ;;  %v400_v54 = vld [vmem:[%s4132_s0 + $0x5e8] sm:$0xff] }
  0x82   : > { %1399 = vmatprep.mubr.f32.mxu1 %v870_v1  ;;  %1519 = vmatpush1.msra.mxu0 %v667_v2  ;;  %v410_v1 = vld [vmem:[%s4132_s0 + $0x638] sm:$0xff]  ;;  %v345_v2 = vld [vmem:[%s4132_s0 + $0x430] sm:$0xff]  ;;  %v464_v55 = vld [vmem:[%s4132_s0 + $0x7e8] sm:$0xff] }
  0x83   : > { %1716 = vmatpush1.msra.mxu1 %v731_v3  ;;  %1203 = vmatmul.mubr.f32.gmra.mxu0 %v867_v6  ;;  %v409_v3 = vld [vmem:[%s4132_s0 + $0x630] sm:$0xff]  ;;  %v655_v6 = vmax.f32 %v347_v59, 0.0  ;;  %v399_v59 = vld [vmem:[%s4132_s0 + $0x5e0] sm:$0xff] }
  0x84   : > { %1400 = vmatmul.mubr.f32.gmra.mxu1 %v869_v7  ;;  %1520 = vmatprep.subr.mxu0 %v666_v8  ;;  %v719_v7 = vmax.f32 %v411_v60, 0.0  ;;  %v654_v8 = vmax.f32 %v346_v0, 0.0  ;;  %v463_v60 = vld [vmem:[%s4132_s0 + $0x7e0] sm:$0xff]  ;;  %v398_v0 = vld [vmem:[%s4132_s0 + $0x5d8] sm:$0xff] }
  0x85   : > { %1717 = vmatprep.subr.mxu1 %v730_v9  ;;  %1521 = vmatpush1.msra.mxu0 %v665_v10  ;;  %v718_v9 = vmax.f32 %v410_v1, 0.0  ;;  %v653_v10 = vmax.f32 %v345_v2, 0.0  ;;  %v462_v1 = vld [vmem:[%s4132_s0 + $0x7d8] sm:$0xff]  ;;  %v947_v2 = vld [vmem:[%s2567_s18 + $0x3c0] sm:$0xff] }
  0x86   : > { %1718 = vmatpush1.msra.mxu1 %v729_v11  ;;  %1208 = vmatprep.mubr.f32.mxu0 %v878_v14  ;;  %v717_v11 = vmax.f32 %v409_v3, 0.0  ;;  %v343_v14 = vld [vmem:[%s4132_s0 + $0x420] sm:$0xff]  ;;  %v949_v3 = vld [vmem:[%s2567_s18 + $0x3d0] sm:$0xff] }
  0x87   : > { %1405 = vmatprep.mubr.f32.mxu1 %v880_v17  ;;  %1209 = vmatmul.mubr.f32.gmra.mxu0 %v877_v20  ;;  %v920_v17 = vld [vmem:[%s2567_s18 + $0x2e8] sm:$0xff]  ;;  %v652_v20 = vmax.f32 %v344_v12, 0.0 }
  0x88   : > { %1406 = vmatmul.mubr.f32.gmra.mxu1 %v879_v21  ;;  %1522 = vmatprep.subr.mxu0 %v664_v22  ;;  %v716_v21 = vmax.f32 %v408_v13, 0.0  ;;  %v342_v22 = vld [vmem:[%s4132_s0 + $0x418] sm:$0xff]  ;;  %v460_v12 = vld [vmem:[%s4132_s0 + $0x7c8] sm:$0xff] }
  0x89   : > { %1719 = vmatprep.subr.mxu1 %v728_v23  ;;  %1523 = vmatpush1.msra.mxu0 %v663_v24  ;;  %v406_v23 = vld [vmem:[%s4132_s0 + $0x618] sm:$0xff]  ;;  %v651_v24 = vmax.f32 %v343_v14, 0.0  ;;  %v960_v13 = vld [vmem:[%s2567_s18 + $0x428] sm:$0xff] }
  0x8a   : > { %1720 = vmatpush1.msra.mxu1 %v727_v25  ;;  %1524 = vmatprep.subr.mxu0 %v662_v28  ;;  %v715_v25 = vmax.f32 %v407_v15, 0.0  ;;  %v405_v28 = vld [vmem:[%s4132_s0 + $0x610] sm:$0xff]  ;;  %v714_v31 = vmax.f32 %v406_v23, 0.0  ;;  %v458_v23 = vld [vmem:[%s4132_s0 + $0x7b8] sm:$0xff] }
  0x8b   : > { %1721 = vmatprep.subr.mxu1 %v726_v29  ;;  %1214 = vmatprep.mubr.f32.mxu0 %v888_v30  ;;  %v930_v29 = vld [vmem:[%s2567_s18 + $0x338] sm:$0xff]  ;;  %v650_v30 = vmax.f32 %v342_v22, 0.0  ;;  %v713_v37 = vmax.f32 %v405_v28, 0.0  ;;  %v457_v28 = vld [vmem:[%s4132_s0 + $0x7b0] sm:$0xff] }
  0x8c   : > { %1411 = vmatprep.mubr.f32.mxu1 %v890_v33  ;;  %1525 = vmatpush1.msra.mxu0 %v661_v34  ;;  %v404_v33 = vld [vmem:[%s4132_s0 + $0x608] sm:$0xff]  ;;  %v927_v34 = vld [vmem:[%s2567_s18 + $0x320] sm:$0xff]  ;;  %v394_v22 = vld [vmem:[%s4132_s0 + $0x5b8] sm:$0xff] }
  0x8d   : > { %1722 = vmatpush1.msra.mxu1 %v725_v35  ;;  %1215 = vmatmul.mubr.f32.gmra.mxu0 %v887_v38  ;;  %v929_v35 = vld [vmem:[%s2567_s18 + $0x330] sm:$0xff]  ;;  %v339_v38 = vld [vmem:[%s4132_s0 + $0x400] sm:$0xff] }
  0x8e   : > { %1412 = vmatmul.mubr.f32.gmra.mxu1 %v889_v39  ;;  %1526 = vmatprep.subr.mxu0 %v660_v40  ;;  %v403_v39 = vld [vmem:[%s4132_s0 + $0x600] sm:$0xff]  ;;  %v648_v40 = vmax.f32 %v340_v32, 0.0  ;;  %v647_v46 = vmax.f32 %v339_v38, 0.0  ;;  %v392_v32 = vld [vmem:[%s4132_s0 + $0x5a8] sm:$0xff] }
  0x8f   : > { %1723 = vmatprep.subr.mxu1 %v724_v41  ;;  %1527 = vmatpush1.msra.mxu0 %v659_v42  ;;  %v712_v41 = vmax.f32 %v404_v33, 0.0  ;;  %v938_v42 = vld [vmem:[%s2567_s18 + $0x378] sm:$0xff]  ;;  %v711_v47 = vmax.f32 %v403_v39, 0.0  ;;  %v456_v33 = vld [vmem:[%s4132_s0 + $0x7a8] sm:$0xff]  ;;  %v391_v38 = vld [vmem:[%s4132_s0 + $0x5a0] sm:$0xff] }
  0x90   : > { %1724 = vmatpush1.msra.mxu1 %v723_v43  ;;  %1220 = vmatprep.mubr.f32.mxu0 %v898_v48  ;;  %v402_v43 = vld [vmem:[%s4132_s0 + $0x5f8] sm:$0xff]  ;;  %v401_v48 = vld [vmem:[%s4132_s0 + $0x5f0] sm:$0xff]  ;;  %v455_v39 = vld [vmem:[%s4132_s0 + $0x7a0] sm:$0xff] }
  0x91   : > { %1417 = vmatprep.mubr.f32.mxu1 %v900_v49  ;;  %1221 = vmatmul.mubr.f32.gmra.mxu0 %v897_v50  ;;  %v465_v49 = vld [vmem:[%s4132_s0 + $0x7f0] sm:$0xff] }
  0x92   : > { %1418 = vmatmul.mubr.f32.gmra.mxu1 %v899_v51  ;;  %1528 = vmatprep.subr.mxu0 %v658_v52  ;;  %v937_v50 = vld [vmem:[%s2567_s18 + $0x370] sm:$0xff]  ;;  %v939_v51 = vld [vmem:[%s2567_s18 + $0x380] sm:$0xff]  ;;  %v710_v52 = vmax.f32 %v402_v43, 0.0  ;;  %v390_v43 = vld [vmem:[%s4132_s0 + $0x598] sm:$0xff] }
  0x93   : > { %1725 = vmatprep.subr.mxu1 %v722_v53  ;;  %1529 = vmatpush1.msra.mxu0 %v657_v56  ;;  %v774_v53 = vmax.f32 %v466_v44, 0.0  ;;  %v709_v56 = vmax.f32 %v401_v48, 0.0  ;;  %v454_v44 = vld [vmem:[%s4132_s0 + $0x798] sm:$0xff]  ;;  %v389_v48 = vld [vmem:[%s4132_s0 + $0x590] sm:$0xff] }
  0x94   : > { %1726 = vmatpush1.msra.mxu1 %v721_v57  ;;  %1226 = vmatprep.mubr.f32.mxu0 %v908_v58  ;;  %v773_v57 = vmax.f32 %v465_v49, 0.0  ;;  %v948_v58 = vld [vmem:[%s2567_s18 + $0x3c8] sm:$0xff]  ;;  %v453_v49 = vld [vmem:[%s4132_s0 + $0x790] sm:$0xff] }
  0x95   : > { %1423 = vmatprep.mubr.f32.mxu1 %v910_v61  ;;  %1530 = vmatprep.subr.mxu0 %v656_v62  ;;  %v950_v61 = vld [vmem:[%s2567_s18 + $0x3d8] sm:$0xff]  ;;  %v708_v62 = vmax.f32 %v400_v54, 0.0  ;;  %v697_v54 = vmax.f32 %v389_v48, 0.0  ;;  %v1017_v48 = vld [vmem:[%s2567_s18 + $0x5f0] sm:$0xff] }
  0x96   : > { %1727 = vmatprep.subr.mxu1 %v720_v63  ;;  %1227 = vmatmul.mubr.f32.gmra.mxu0 %v907_v4  ;;  %v772_v63 = vmax.f32 %v464_v55, 0.0  ;;  %v707_v4 = vmax.f32 %v399_v59, 0.0  ;;  %v761_v55 = vmax.f32 %v453_v49, 0.0  ;;  %v387_v59 = vld [vmem:[%s4132_s0 + $0x580] sm:$0xff] }
  0x97   : > { %1424 = vmatmul.mubr.f32.gmra.mxu1 %v909_v5  ;;  %1531 = vmatpush1.msra.mxu0 %v655_v6  ;;  %v771_v5 = vmax.f32 %v463_v60, 0.0  ;;  %v397_v6 = vld [vmem:[%s4132_s0 + $0x5d0] sm:$0xff]  ;;  %v451_v60 = vld [vmem:[%s4132_s0 + $0x780] sm:$0xff] }
  0x98   : > { %1728 = vmatpush1.msra.mxu1 %v719_v7  ;;  %1532 = vmatprep.subr.mxu0 %v654_v8  ;;  %v461_v7 = vld [vmem:[%s4132_s0 + $0x7d0] sm:$0xff]  ;;  %v706_v8 = vmax.f32 %v398_v0, 0.0  ;;  %v705_v14 = vmax.f32 %v397_v6, 0.0  ;;  %v987_v0 = vld [vmem:[%s2567_s18 + $0x500] sm:$0xff] }
  0x99   : > { %1729 = vmatprep.subr.mxu1 %v718_v9  ;;  %1533 = vmatpush1.msra.mxu0 %v653_v10  ;;  %v770_v9 = vmax.f32 %v462_v1, 0.0  ;;  %v958_v10 = vld [vmem:[%s2567_s18 + $0x418] sm:$0xff]  ;;  %v769_v15 = vmax.f32 %v461_v7, 0.0  ;;  %v989_v1 = vld [vmem:[%s2567_s18 + $0x510] sm:$0xff]  ;;  %v1019_v49 = vld [vmem:[%s2567_s18 + $0x600] sm:$0xff] }
  0x9a   : > { %1730 = vmatpush1.msra.mxu1 %v717_v11  ;;  %1232 = vmatprep.mubr.f32.mxu0 %v918_v16  ;;  %v396_v11 = vld [vmem:[%s4132_s0 + $0x5c8] sm:$0xff]  ;;  %v395_v16 = vld [vmem:[%s4132_s0 + $0x5c0] sm:$0xff]  ;;  %v385_v6 = vld [vmem:[%s4132_s0 + $0x570] sm:$0xff] }
  0x9b   : > { %1429 = vmatprep.mubr.f32.mxu1 %v920_v17  ;;  %1233 = vmatmul.mubr.f32.gmra.mxu0 %v917_v18  ;;  %v459_v17 = vld [vmem:[%s4132_s0 + $0x7c0] sm:$0xff]  ;;  %v957_v18 = vld [vmem:[%s2567_s18 + $0x410] sm:$0xff] }
  0x9c   : > { %1430 = vmatmul.mubr.f32.gmra.mxu1 %v919_v19  ;;  %1534 = vmatprep.subr.mxu0 %v652_v20  ;;  %v959_v19 = vld [vmem:[%s2567_s18 + $0x420] sm:$0xff]  ;;  %v704_v20 = vmax.f32 %v396_v11, 0.0  ;;  %v449_v7 = vld [vmem:[%s4132_s0 + $0x770] sm:$0xff]  ;;  %v384_v11 = vld [vmem:[%s4132_s0 + $0x568] sm:$0xff] }
  0x9d   : > { %1731 = vmatprep.subr.mxu1 %v716_v21  ;;  %1535 = vmatpush1.msra.mxu0 %v651_v24  ;;  %v768_v21 = vmax.f32 %v460_v12, 0.0  ;;  %v703_v24 = vmax.f32 %v395_v16, 0.0  ;;  %v448_v12 = vld [vmem:[%s4132_s0 + $0x768] sm:$0xff]  ;;  %v383_v16 = vld [vmem:[%s4132_s0 + $0x560] sm:$0xff] }
  0x9e   : > { %1732 = vmatpush1.msra.mxu1 %v715_v25  ;;  %1238 = vmatprep.mubr.f32.mxu0 %v928_v26  ;;  %v767_v25 = vmax.f32 %v459_v17, 0.0  ;;  %v968_v26 = vld [vmem:[%s2567_s18 + $0x468] sm:$0xff]  ;;  %v447_v17 = vld [vmem:[%s4132_s0 + $0x760] sm:$0xff] }
  0x9f   : > { %1435 = vmatprep.mubr.f32.mxu1 %v930_v29  ;;  %1536 = vmatprep.subr.mxu0 %v650_v30  ;;  %v970_v29 = vld [vmem:[%s2567_s18 + $0x478] sm:$0xff]  ;;  %v702_v30 = vmax.f32 %v394_v22, 0.0  ;;  %v691_v22 = vmax.f32 %v383_v16, 0.0  ;;  %v1039_v16 = vld [vmem:[%s2567_s18 + $0x6a0] sm:$0xff] }
  0xa0   : > { %1733 = vmatprep.subr.mxu1 %v714_v31  ;;  %1239 = vmatmul.mubr.f32.gmra.mxu0 %v927_v34  ;;  %v766_v31 = vmax.f32 %v458_v23, 0.0  ;;  %v967_v34 = vld [vmem:[%s2567_s18 + $0x460] sm:$0xff]  ;;  %v755_v23 = vmax.f32 %v447_v17, 0.0 }
  0xa1   : > { %1436 = vmatmul.mubr.f32.gmra.mxu1 %v929_v35  ;;  %1537 = vmatpush1.msra.mxu0 %v649_v36  ;;  %v969_v35 = vld [vmem:[%s2567_s18 + $0x470] sm:$0xff]  ;;  %v701_v36 = vmax.f32 %v393_v27, 0.0 }
  0xa2   : > { %1734 = vmatpush1.msra.mxu1 %v713_v37  ;;  %1538 = vmatprep.subr.mxu0 %v648_v40  ;;  %v765_v37 = vmax.f32 %v457_v28, 0.0  ;;  %v700_v40 = vmax.f32 %v392_v32, 0.0  ;;  %v445_v27 = vld [vmem:[%s4132_s0 + $0x750] sm:$0xff]  ;;  %v1008_v28 = vld [vmem:[%s2567_s18 + $0x5a8] sm:$0xff] }
  0xa3   : > { %1735 = vmatprep.subr.mxu1 %v712_v41  ;;  %1244 = vmatprep.mubr.f32.mxu0 %v938_v42  ;;  %v764_v41 = vmax.f32 %v456_v33, 0.0  ;;  %v978_v42 = vld [vmem:[%s2567_s18 + $0x4b8] sm:$0xff] }
  0xa4   : > { %1441 = vmatprep.mubr.f32.mxu1 %v940_v45  ;;  %1539 = vmatpush1.msra.mxu0 %v647_v46  ;;  %v980_v45 = vld [vmem:[%s2567_s18 + $0x4c8] sm:$0xff]  ;;  %v699_v46 = vmax.f32 %v391_v38, 0.0  ;;  %v1018_v38 = vld [vmem:[%s2567_s18 + $0x5f8] sm:$0xff] }
  0xa5   : > { %1736 = vmatpush1.msra.mxu1 %v711_v47  ;;  %1245 = vmatmul.mubr.f32.gmra.mxu0 %v937_v50  ;;  %v763_v47 = vmax.f32 %v455_v39, 0.0  ;;  %v977_v50 = vld [vmem:[%s2567_s18 + $0x4b0] sm:$0xff]  ;;  %v379_v39 = vld [vmem:[%s4132_s0 + $0x540] sm:$0xff] }
  0xa6   : > { %1442 = vmatmul.mubr.f32.gmra.mxu1 %v939_v51  ;;  %1540 = vmatprep.subr.mxu0 %v710_v52  ;;  %v979_v51 = vld [vmem:[%s2567_s18 + $0x4c0] sm:$0xff]  ;;  %v698_v52 = vmax.f32 %v390_v43, 0.0 }
  0xa7   : > { %1737 = vmatprep.subr.mxu1 %v774_v53  ;;  %1541 = vmatpush2.msra.mxu0 %v709_v56  ;;  %v762_v53 = vmax.f32 %v454_v44, 0.0  ;;  %v388_v56 = vld [vmem:[%s4132_s0 + $0x588] sm:$0xff]  ;;  %v378_v44 = vld [vmem:[%s4132_s0 + $0x538] sm:$0xff] }
  0xa8   : > { %1738 = vmatpush2.msra.mxu1 %v773_v57  ;;  %1250 = vmatprep.mubr.f32.mxu0 %v948_v58  ;;  %v452_v57 = vld [vmem:[%s4132_s0 + $0x788] sm:$0xff] }
  0xa9   : > { %1447 = vmatprep.mubr.f32.mxu1 %v950_v61  ;;  %1542 = vmatprep.subr.mxu0 %v708_v62  ;;  %v988_v58 = vld [vmem:[%s2567_s18 + $0x508] sm:$0xff]  ;;  %v990_v61 = vld [vmem:[%s2567_s18 + $0x518] sm:$0xff] }
  0xaa   : > { %1739 = vmatprep.subr.mxu1 %v772_v63  ;;  %1251 = vmatmul.mubr.f32.gmra.mxu0 %v947_v2  ;;  %v386_v62 = vld [vmem:[%s4132_s0 + $0x578] sm:$0xff]  ;;  %v696_v2 = vmax.f32 %v388_v56, 0.0  ;;  %v376_v56 = vld [vmem:[%s4132_s0 + $0x528] sm:$0xff] }
  0xab   : > { %1448 = vmatmul.mubr.f32.gmra.mxu1 %v949_v3  ;;  %1543 = vmatpush2.msra.mxu0 %v707_v4  ;;  %v450_v63 = vld [vmem:[%s4132_s0 + $0x778] sm:$0xff]  ;;  %v760_v3 = vmax.f32 %v452_v57, 0.0  ;;  %v695_v4 = vmax.f32 %v387_v59, 0.0  ;;  %v440_v57 = vld [vmem:[%s4132_s0 + $0x728] sm:$0xff]  ;;  %v439_v59 = vld [vmem:[%s4132_s0 + $0x720] sm:$0xff] }
  0xac   : > { %1740 = vmatpush2.msra.mxu1 %v771_v5  ;;  %1544 = vmatprep.subr.mxu0 %v706_v8  ;;  %v759_v5 = vmax.f32 %v451_v60, 0.0  ;;  %v694_v8 = vmax.f32 %v386_v62, 0.0  ;;  %v1028_v60 = vld [vmem:[%s2567_s18 + $0x648] sm:$0xff]  ;;  %v1027_v62 = vld [vmem:[%s2567_s18 + $0x640] sm:$0xff] }
  0xad   : > { %1741 = vmatprep.subr.mxu1 %v770_v9  ;;  %1256 = vmatprep.mubr.f32.mxu0 %v958_v10  ;;  %v758_v9 = vmax.f32 %v450_v63, 0.0  ;;  %v998_v10 = vld [vmem:[%s2567_s18 + $0x558] sm:$0xff]  ;;  %v1029_v63 = vld [vmem:[%s2567_s18 + $0x650] sm:$0xff] }
  0xae   : > { %1453 = vmatprep.mubr.f32.mxu1 %v960_v13  ;;  %1545 = vmatpush2.msra.mxu0 %v705_v14  ;;  %v1000_v13 = vld [vmem:[%s2567_s18 + $0x568] sm:$0xff]  ;;  %v693_v14 = vmax.f32 %v385_v6, 0.0  ;;  %v1038_v6 = vld [vmem:[%s2567_s18 + $0x698] sm:$0xff] }
  0xaf   : > { %1742 = vmatpush2.msra.mxu1 %v769_v15  ;;  %1257 = vmatmul.mubr.f32.gmra.mxu0 %v957_v18  ;;  %v757_v15 = vmax.f32 %v449_v7, 0.0  ;;  %v997_v18 = vld [vmem:[%s2567_s18 + $0x550] sm:$0xff] }
  0xb0   : > { %1454 = vmatmul.mubr.f32.gmra.mxu1 %v959_v19  ;;  %1546 = vmatprep.subr.mxu0 %v704_v20  ;;  %v999_v19 = vld [vmem:[%s2567_s18 + $0x560] sm:$0xff]  ;;  %v692_v20 = vmax.f32 %v384_v11, 0.0  ;;  %v373_v7 = vld [vmem:[%s4132_s0 + $0x510] sm:$0xff] }
  0xb1   : > { %1743 = vmatprep.subr.mxu1 %v768_v21  ;;  %1547 = vmatpush2.msra.mxu0 %v703_v24  ;;  %v756_v21 = vmax.f32 %v448_v12, 0.0  ;;  %v382_v24 = vld [vmem:[%s4132_s0 + $0x558] sm:$0xff]  ;;  %v372_v12 = vld [vmem:[%s4132_s0 + $0x508] sm:$0xff]  ;;  %v681_v17 = vmax.f32 %v373_v7, 0.0 }
  0xb2   : > { %1744 = vmatpush2.msra.mxu1 %v767_v25  ;;  %1262 = vmatprep.mubr.f32.mxu0 %v968_v26  ;;  %v446_v25 = vld [vmem:[%s4132_s0 + $0x758] sm:$0xff]  ;;  %v381_v26 = vld [vmem:[%s4132_s0 + $0x550] sm:$0xff]  ;;  %v690_v32 = vmax.f32 %v382_v24, 0.0  ;;  %v832_v24 = vld [vmem:[%s2567_s18 + $0x28] sm:$0xff] }
  0xb3   : > { %1459 = vmatprep.mubr.f32.mxu1 %v970_v29  ;;  %1548 = vmatprep.subr.mxu0 %v702_v30  ;;  %v1010_v29 = vld [vmem:[%s2567_s18 + $0x5b8] sm:$0xff]  ;;  %v1007_v30 = vld [vmem:[%s2567_s18 + $0x5a0] sm:$0xff]  ;;  %v754_v33 = vmax.f32 %v446_v25, 0.0  ;;  %v884_v7 = vld [vmem:[%s2567_s18 + $0x1c8] sm:$0xff] }
  0xb4   : > { %1745 = vmatprep.subr.mxu1 %v766_v31  ;;  %1263 = vmatmul.mubr.f32.gmra.mxu0 %v967_v34  ;;  %v1009_v31 = vld [vmem:[%s2567_s18 + $0x5b0] sm:$0xff]  ;;  %v380_v34 = vld [vmem:[%s4132_s0 + $0x548] sm:$0xff] }
  0xb5   : > { %1460 = vmatmul.mubr.f32.gmra.mxu1 %v969_v35  ;;  %1549 = vmatpush2.msra.mxu0 %v701_v36  ;;  %v444_v35 = vld [vmem:[%s4132_s0 + $0x748] sm:$0xff]  ;;  %v689_v36 = vmax.f32 %v381_v26, 0.0  ;;  %v497_v26 = vld [vmem:[%s4132_s0 + $0x8f0] sm:$0xff] }
  0xb6   : > { %1746 = vmatpush2.msra.mxu1 %v765_v37  ;;  %1550 = vmatprep.subr.mxu0 %v700_v40  ;;  %v753_v37 = vmax.f32 %v445_v27, 0.0  ;;  %v443_v40 = vld [vmem:[%s4132_s0 + $0x740] sm:$0xff]  ;;  %v752_v43 = vmax.f32 %v444_v35, 0.0  ;;  %v834_v27 = vld [vmem:[%s2567_s18 + $0x38] sm:$0xff]  ;;  %v844_v35 = vld [vmem:[%s2567_s18 + $0x88] sm:$0xff] }
  0xb7   : > { %1747 = vmatprep.subr.mxu1 %v764_v41  ;;  %1268 = vmatprep.mubr.f32.mxu0 %v978_v42  ;;  %v1020_v41 = vld [vmem:[%s2567_s18 + $0x608] sm:$0xff]  ;;  %v688_v42 = vmax.f32 %v380_v34, 0.0  ;;  %v842_v34 = vld [vmem:[%s2567_s18 + $0x78] sm:$0xff] }
  0xb8   : > { %1465 = vmatprep.mubr.f32.mxu1 %v980_v45  ;;  %1551 = vmatpush2.msra.mxu0 %v699_v46  ;;  %v442_v45 = vld [vmem:[%s4132_s0 + $0x738] sm:$0xff]  ;;  %v377_v46 = vld [vmem:[%s4132_s0 + $0x530] sm:$0xff] }
  0xb9   : > { %1748 = vmatpush2.msra.mxu1 %v763_v47  ;;  %1269 = vmatmul.mubr.f32.gmra.mxu0 %v977_v50  ;;  %v441_v47 = vld [vmem:[%s4132_s0 + $0x730] sm:$0xff]  ;;  %v687_v50 = vmax.f32 %v379_v39, 0.0  ;;  %v494_v39 = vld [vmem:[%s4132_s0 + $0x8d8] sm:$0xff] }
  0xba   : > { %1466 = vmatmul.mubr.f32.gmra.mxu1 %v979_v51  ;;  %1552 = vmatprep.subr.mxu0 %v698_v52  ;;  %v751_v51 = vmax.f32 %v443_v40, 0.0  ;;  %v686_v52 = vmax.f32 %v378_v44, 0.0  ;;  %v802_v44 = vmax.f32 %v494_v39, 0.0  ;;  %v476_v39 = vld [vmem:[%s4132_s0 + $0x848] sm:$0xff] }
  0xbb   : > { %1749 = vmatprep.subr.mxu1 %v762_v53  ;;  %1553 = vmatpush2.msra.mxu0 %v697_v54  ;;  %v750_v53 = vmax.f32 %v442_v45, 0.0  ;;  %v685_v54 = vmax.f32 %v377_v46, 0.0  ;;  %v492_v45 = vld [vmem:[%s4132_s0 + $0x8c8] sm:$0xff]  ;;  %v851_v46 = vld [vmem:[%s2567_s18 + $0xc0] sm:$0xff] }
  0xbc   : > { %1750 = vmatpush2.msra.mxu1 %v761_v55  ;;  %1274 = vmatprep.mubr.f32.mxu0 %v988_v58  ;;  %v749_v55 = vmax.f32 %v441_v47, 0.0  ;;  %v375_v58 = vld [vmem:[%s4132_s0 + $0x520] sm:$0xff]  ;;  %v853_v47 = vld [vmem:[%s2567_s18 + $0xd0] sm:$0xff] }
  0xbd   : > { %1471 = vmatprep.mubr.f32.mxu1 %v990_v61  ;;  %1275 = vmatmul.mubr.f32.gmra.mxu0 %v987_v0  ;;  %v1030_v61 = vld [vmem:[%s2567_s18 + $0x658] sm:$0xff]  ;;  %v684_v0 = vmax.f32 %v376_v56, 0.0 }
  0xbe   : > { %1472 = vmatmul.mubr.f32.gmra.mxu1 %v989_v1  ;;  %1554 = vmatprep.subr.mxu0 %v696_v2  ;;  %v748_v1 = vmax.f32 %v440_v57, 0.0  ;;  %v374_v2 = vld [vmem:[%s4132_s0 + $0x518] sm:$0xff]  ;;  %v489_v57 = vld [vmem:[%s4132_s0 + $0x8b0] sm:$0xff] }
  0xbf   : > { %1751 = vmatprep.subr.mxu1 %v760_v3  ;;  %1555 = vmatpush2.msra.mxu0 %v695_v4  ;;  %v438_v3 = vld [vmem:[%s4132_s0 + $0x718] sm:$0xff]  ;;  %v683_v4 = vmax.f32 %v375_v58, 0.0 }
  0xc0   : > { %1752 = vmatpush2.msra.mxu1 %v759_v5  ;;  %1556 = vmatprep.subr.mxu0 %v694_v8  ;;  %v747_v5 = vmax.f32 %v439_v59, 0.0  ;;  %v437_v8 = vld [vmem:[%s4132_s0 + $0x710] sm:$0xff]  ;;  %v746_v11 = vmax.f32 %v438_v3, 0.0  ;;  %v488_v59 = vld [vmem:[%s4132_s0 + $0x8a8] sm:$0xff] }
  0xc1   : > { %1753 = vmatprep.subr.mxu1 %v758_v9  ;;  %1280 = vmatprep.mubr.f32.mxu0 %v998_v10  ;;  %v1040_v9 = vld [vmem:[%s2567_s18 + $0x6a8] sm:$0xff]  ;;  %v682_v10 = vmax.f32 %v374_v2, 0.0  ;;  %v796_v2 = vmax.f32 %v488_v59, 0.0 }
  0xc2   : > { %1477 = vmatprep.mubr.f32.mxu1 %v1000_v13  ;;  %1557 = vmatpush2.msra.mxu0 %v693_v14  ;;  %v436_v13 = vld [vmem:[%s4132_s0 + $0x708] sm:$0xff]  ;;  %v371_v14 = vld [vmem:[%s4132_s0 + $0x500] sm:$0xff] }
  0xc3   : > { %1754 = vmatpush2.msra.mxu1 %v757_v15  ;;  %1281 = vmatmul.mubr.f32.gmra.mxu0 %v997_v18  ;;  %v1037_v15 = vld [vmem:[%s2567_s18 + $0x690] sm:$0xff]  ;;  %v745_v18 = vmax.f32 %v437_v8, 0.0  ;;  %v944_v59 = vld [vmem:[%s2567_s18 + $0x3a8] sm:$0xff] }
  0xc4   : > { %1478 = vmatmul.mubr.f32.gmra.mxu1 %v999_v19  ;;  %1558 = vmatprep.subr.mxu0 %v692_v20  ;;  %v435_v19 = vld [vmem:[%s4132_s0 + $0x700] sm:$0xff]  ;;  %v680_v20 = vmax.f32 %v372_v12, 0.0  ;;  %v881_v8 = vld [vmem:[%s2567_s18 + $0x1b0] sm:$0xff]  ;;  %v484_v12 = vld [vmem:[%s4132_s0 + $0x888] sm:$0xff] }
  0xc5   : > { %1755 = vmatprep.subr.mxu1 %v756_v21  ;;  %1559 = vmatpush2.msra.mxu0 %v691_v22  ;;  %v744_v21 = vmax.f32 %v436_v13, 0.0  ;;  %v679_v22 = vmax.f32 %v371_v14, 0.0  ;;  %v743_v25 = vmax.f32 %v435_v19, 0.0  ;;  %v483_v13 = vld [vmem:[%s4132_s0 + $0x880] sm:$0xff]  ;;  %v892_v14 = vld [vmem:[%s2567_s18 + $0x208] sm:$0xff] }
  0xc6   : > { %1756 = vmatpush2.msra.mxu1 %v755_v23  ;;  %1286 = vmatprep.mubr.f32.mxu0 %v1008_v28  ;;  %v498_v23 = vld [vmem:[%s4132_s0 + $0x8f8] sm:$0xff]  ;;  %v831_v28 = vld [vmem:[%s2567_s18 + $0x20] sm:$0xff]  ;;  %v791_v19 = vmax.f32 %v483_v13, 0.0 }
  0xc7   : > { %1483 = vmatprep.mubr.f32.mxu1 %v1010_v29  ;;  %1287 = vmatmul.mubr.f32.gmra.mxu0 %v1007_v30  ;;  %v833_v29 = vld [vmem:[%s2567_s18 + $0x30] sm:$0xff]  ;;  %v806_v30 = vmax.f32 %v498_v23, 0.0  ;;  %v904_v23 = vld [vmem:[%s2567_s18 + $0x268] sm:$0xff]  ;;  %v518_v13 = vld [vmem:[%s4132_s0 + $0x998] sm:$0xff] }
  0xc8   : > { %1484 = vmatmul.mubr.f32.gmra.mxu1 %v1009_v31  ;;  %1560 = vmatprep.subr.mxu0 %v690_v32  ;;  %v805_v31 = vmax.f32 %v497_v26, 0.0  ;;  %v496_v32 = vld [vmem:[%s4132_s0 + $0x8e8] sm:$0xff] }
  0xc9   : > { %1757 = vmatprep.subr.mxu1 %v754_v33  ;;  %1561 = vmatpush2.msra.mxu0 %v689_v36  ;;  %v495_v33 = vld [vmem:[%s4132_s0 + $0x8e0] sm:$0xff]  ;;  %v841_v36 = vld [vmem:[%s2567_s18 + $0x70] sm:$0xff] }
  0xca   : > { %1758 = vmatpush2.msra.mxu1 %v753_v37  ;;  %1292 = vmatprep.mubr.f32.mxu0 %v1018_v38  ;;  %v843_v37 = vld [vmem:[%s2567_s18 + $0x80] sm:$0xff]  ;;  %v804_v38 = vmax.f32 %v496_v32, 0.0  ;;  %v803_v40 = vmax.f32 %v495_v33, 0.0  ;;  %v478_v33 = vld [vmem:[%s4132_s0 + $0x858] sm:$0xff] }
  0xcb   : > { %1489 = vmatprep.mubr.f32.mxu1 %v1020_v41  ;;  %1562 = vmatprep.subr.mxu0 %v688_v42  ;;  %v493_v41 = vld [vmem:[%s4132_s0 + $0x8d0] sm:$0xff]  ;;  %v852_v42 = vld [vmem:[%s2567_s18 + $0xc8] sm:$0xff] }
  0xcc   : > { %1759 = vmatprep.subr.mxu1 %v752_v43  ;;  %1293 = vmatmul.mubr.f32.gmra.mxu0 %v1017_v48  ;;  %v854_v43 = vld [vmem:[%s2567_s18 + $0xd8] sm:$0xff]  ;;  %v801_v48 = vmax.f32 %v493_v41, 0.0  ;;  %v924_v41 = vld [vmem:[%s2567_s18 + $0x308] sm:$0xff] }
  0xcd   : > { %1490 = vmatmul.mubr.f32.gmra.mxu1 %v1019_v49  ;;  %1563 = vmatpush2.msra.mxu0 %v687_v50  ;;  %v491_v49 = vld [vmem:[%s4132_s0 + $0x8c0] sm:$0xff]  ;;  %v862_v50 = vld [vmem:[%s2567_s18 + $0x118] sm:$0xff] }
  0xce   : > { %1760 = vmatpush2.msra.mxu1 %v751_v51  ;;  %1564 = vmatprep.subr.mxu0 %v686_v52  ;;  %v864_v51 = vld [vmem:[%s2567_s18 + $0x128] sm:$0xff]  ;;  %v800_v52 = vmax.f32 %v492_v45, 0.0  ;;  %v799_v56 = vmax.f32 %v491_v49, 0.0  ;;  %v923_v45 = vld [vmem:[%s2567_s18 + $0x300] sm:$0xff]  ;;  %v934_v49 = vld [vmem:[%s2567_s18 + $0x358] sm:$0xff] }
  0xcf   : > { %1761 = vmatprep.subr.mxu1 %v750_v53  ;;  %1565 = vmatpush2.msra.mxu0 %v685_v54  ;;  %v490_v53 = vld [vmem:[%s4132_s0 + $0x8b8] sm:$0xff]  ;;  %v861_v54 = vld [vmem:[%s2567_s18 + $0x110] sm:$0xff] }
  0xd0   : > { %1762 = vmatpush2.msra.mxu1 %v749_v55  ;;  %1298 = vmatprep.mubr.f32.mxu0 %v1028_v60  ;;  %v863_v55 = vld [vmem:[%s2567_s18 + $0x120] sm:$0xff]  ;;  %v798_v58 = vmax.f32 %v490_v53, 0.0  ;;  %v872_v60 = vld [vmem:[%s2567_s18 + $0x168] sm:$0xff]  ;;  %v933_v53 = vld [vmem:[%s2567_s18 + $0x350] sm:$0xff] }
  0xd1   : > { %1495 = vmatprep.mubr.f32.mxu1 %v1030_v61  ;;  %1299 = vmatmul.mubr.f32.gmra.mxu0 %v1027_v62  ;;  %v874_v61 = vld [vmem:[%s2567_s18 + $0x178] sm:$0xff]  ;;  %v797_v62 = vmax.f32 %v489_v57, 0.0  ;;  %v471_v57 = vld [vmem:[%s4132_s0 + $0x820] sm:$0xff] }
  0xd2   : > { %1496 = vmatmul.mubr.f32.gmra.mxu1 %v1029_v63  ;;  %1566 = vmatprep.subr.mxu0 %v684_v0  ;;  %v487_v63 = vld [vmem:[%s4132_s0 + $0x8a0] sm:$0xff] }
  0xd3   : > { %1763 = vmatprep.subr.mxu1 %v748_v1  ;;  %1567 = vmatpush2.msra.mxu0 %v683_v4  ;;  %v871_v0 = vld [vmem:[%s2567_s18 + $0x160] sm:$0xff]  ;;  %v873_v1 = vld [vmem:[%s2567_s18 + $0x170] sm:$0xff]  ;;  %v795_v3 = vmax.f32 %v487_v63, 0.0  ;;  %v486_v4 = vld [vmem:[%s4132_s0 + $0x898] sm:$0xff]  ;;  %v779_v63 = vmax.f32 %v471_v57, 0.0 }
  0xd4   : > { %1764 = vmatpush2.msra.mxu1 %v747_v5  ;;  %1304 = vmatprep.mubr.f32.mxu0 %v1038_v6  ;;  %v485_v5 = vld [vmem:[%s4132_s0 + $0x890] sm:$0xff]  ;;  %v882_v6 = vld [vmem:[%s2567_s18 + $0x1b8] sm:$0xff] }
  0xd5   : > { %1501 = vmatprep.mubr.f32.mxu1 %v1040_v9  ;;  %1568 = vmatprep.subr.mxu0 %v682_v10  ;;  %v883_v9 = vld [vmem:[%s2567_s18 + $0x1c0] sm:$0xff]  ;;  %v794_v10 = vmax.f32 %v486_v4, 0.0  ;;  %v1013_v57 = vld [vmem:[%s2567_s18 + $0x5d0] sm:$0xff] }
  0xd6   : > { %1765 = vmatprep.subr.mxu1 %v746_v11  ;;  %1305 = vmatmul.mubr.f32.gmra.mxu0 %v1037_v15  ;;  %v793_v11 = vmax.f32 %v485_v5, 0.0  ;;  %v894_v15 = vld [vmem:[%s2567_s18 + $0x218] sm:$0xff]  ;;  %v951_v4 = vld [vmem:[%s2567_s18 + $0x3e0] sm:$0xff]  ;;  %v953_v5 = vld [vmem:[%s2567_s18 + $0x3f0] sm:$0xff] }
  0xd7   : > { %1502 = vmatmul.mubr.f32.gmra.mxu1 %v1039_v16  ;;  %1569 = vmatpush2.msra.mxu0 %v681_v17  ;;  %v891_v16 = vld [vmem:[%s2567_s18 + $0x200] sm:$0xff]  ;;  %v893_v17 = vld [vmem:[%s2567_s18 + $0x210] sm:$0xff] }
  0xd8   : > { %1766 = vmatpush2.msra.mxu1 %v745_v18  ;;  %1570 = vmatprep.subr.mxu0 %v680_v20  ;;  %v792_v18 = vmax.f32 %v484_v12, 0.0  ;;  %v482_v20 = vld [vmem:[%s4132_s0 + $0x878] sm:$0xff] }
  0xd9   : > { %1767 = vmatprep.subr.mxu1 %v744_v21  ;;  %1571 = vmatpush2.msra.mxu0 %v679_v22  ;;  %v481_v21 = vld [vmem:[%s4132_s0 + $0x870] sm:$0xff]  ;;  %v902_v22 = vld [vmem:[%s2567_s18 + $0x258] sm:$0xff]  ;;  %v790_v26 = vmax.f32 %v482_v20, 0.0  ;;  %v826_v20 = vmax.f32 %v518_v13, 0.0 }
  0xda   : > { %1572 = vmatprep.mubr.f32.mxu0 %v832_v24  ;;  %1768 = vmatpush2.msra.mxu1 %v743_v25  ;;  %v901_v24 = vld [vmem:[%s2567_s18 + $0x250] sm:$0xff]  ;;  %v903_v25 = vld [vmem:[%s2567_s18 + $0x260] sm:$0xff] }
  0xdb   : > { %1769 = vmatprep.mubr.f32.mxu1 %v834_v27  ;;  %1573 = vmatmul.mubr.f32.vlgmr.msra.gmra.mxu0 %v831_v28  ;;  %v480_v27 = vld [vmem:[%s4132_s0 + $0x868] sm:$0xff]  ;;  %v789_v28 = vmax.f32 %v481_v21, 0.0 }
  0xdc   : > { %1770 = vmatmul.mubr.f32.vlgmr.msra.gmra.mxu1 %v833_v29  ;;  %1902 = vmatprep.subr.mxu0 %v806_v30  ;;  %v479_v29 = vld [vmem:[%s4132_s0 + $0x860] sm:$0xff]  ;;  %v788_v32 = vmax.f32 %v480_v27, 0.0  ;;  %v516_v21 = vld [vmem:[%s4132_s0 + $0x988] sm:$0xff]  ;;  %v514_v27 = vld [vmem:[%s4132_s0 + $0x978] sm:$0xff] }
  0xdd   : > { %2291 = vmatprep.subr.mxu1 %v806_v30  ;;  %1903 = vmatpush1.msra.mxu0 %v805_v31  ;;  %v912_v30 = vld [vmem:[%s2567_s18 + $0x2a8] sm:$0xff] }
  0xde   : > { %2317 = vmatpush1.msra.mxu1 %v805_v31  ;;  %1578 = vmatprep.mubr.f32.mxu0 %v842_v34  ;;  %v914_v31 = vld [vmem:[%s2567_s18 + $0x2b8] sm:$0xff]  ;;  %v911_v34 = vld [vmem:[%s2567_s18 + $0x2a0] sm:$0xff] }
  0xdf   : > { %1775 = vmatprep.mubr.f32.mxu1 %v844_v35  ;;  %1579 = vmatmul.mubr.f32.gmra.mxu0 %v841_v36  ;;  %v913_v35 = vld [vmem:[%s2567_s18 + $0x2b0] sm:$0xff]  ;;  %v787_v36 = vmax.f32 %v479_v29, 0.0  ;;  %v984_v29 = vld [vmem:[%s2567_s18 + $0x4e8] sm:$0xff] }
  0xe0   : > { %1776 = vmatmul.mubr.f32.gmra.mxu1 %v843_v37  ;;  %1904 = vmatprep.subr.mxu0 %v804_v38  ;;  %v477_v37 = vld [vmem:[%s4132_s0 + $0x850] sm:$0xff] }
  0xe1   : > { %2292 = vmatprep.subr.mxu1 %v804_v38  ;;  %1905 = vmatpush1.msra.mxu0 %v803_v40  ;;  %v786_v38 = vmax.f32 %v478_v33, 0.0  ;;  %v983_v33 = vld [vmem:[%s2567_s18 + $0x4e0] sm:$0xff] }
  0xe2   : > { %2318 = vmatpush1.msra.mxu1 %v803_v40  ;;  %1584 = vmatprep.mubr.f32.mxu0 %v852_v42  ;;  %v922_v40 = vld [vmem:[%s2567_s18 + $0x2f8] sm:$0xff]  ;;  %v785_v42 = vmax.f32 %v477_v37, 0.0  ;;  %v511_v37 = vld [vmem:[%s4132_s0 + $0x960] sm:$0xff] }
  0xe3   : > { %1781 = vmatprep.mubr.f32.mxu1 %v854_v43  ;;  %1906 = vmatprep.subr.mxu0 %v802_v44  ;;  %v475_v43 = vld [vmem:[%s4132_s0 + $0x840] sm:$0xff] }
  0xe4   : > { %2293 = vmatprep.subr.mxu1 %v802_v44  ;;  %1585 = vmatmul.mubr.f32.gmra.mxu0 %v851_v46  ;;  %v921_v44 = vld [vmem:[%s2567_s18 + $0x2f0] sm:$0xff]  ;;  %v784_v46 = vmax.f32 %v476_v39, 0.0  ;;  %v994_v39 = vld [vmem:[%s2567_s18 + $0x538] sm:$0xff] }
  0xe5   : > { %1782 = vmatmul.mubr.f32.gmra.mxu1 %v853_v47  ;;  %1907 = vmatpush1.msra.mxu0 %v801_v48  ;;  %v474_v47 = vld [vmem:[%s4132_s0 + $0x838] sm:$0xff] }
  0xe6   : > { %2319 = vmatpush1.msra.mxu1 %v801_v48  ;;  %1590 = vmatprep.mubr.f32.mxu0 %v862_v50  ;;  %v932_v48 = vld [vmem:[%s2567_s18 + $0x348] sm:$0xff]  ;;  %v783_v50 = vmax.f32 %v475_v43, 0.0  ;;  %v819_v43 = vmax.f32 %v511_v37, 0.0 }
  0xe7   : > { %1787 = vmatprep.mubr.f32.mxu1 %v864_v51  ;;  %1908 = vmatprep.subr.mxu0 %v800_v52  ;;  %v473_v51 = vld [vmem:[%s4132_s0 + $0x830] sm:$0xff] }
  0xe8   : > { %2294 = vmatprep.subr.mxu1 %v800_v52  ;;  %1591 = vmatmul.mubr.f32.gmra.mxu0 %v861_v54  ;;  %v931_v52 = vld [vmem:[%s2567_s18 + $0x340] sm:$0xff]  ;;  %v782_v54 = vmax.f32 %v474_v47, 0.0  ;;  %v1004_v47 = vld [vmem:[%s2567_s18 + $0x588] sm:$0xff] }
  0xe9   : > { %1788 = vmatmul.mubr.f32.gmra.mxu1 %v863_v55  ;;  %1909 = vmatpush1.msra.mxu0 %v799_v56  ;;  %v781_v55 = vmax.f32 %v473_v51, 0.0 }
  0xea   : > { %2320 = vmatpush1.msra.mxu1 %v799_v56  ;;  %1910 = vmatprep.subr.mxu0 %v798_v58  ;;  %v472_v56 = vld [vmem:[%s4132_s0 + $0x828] sm:$0xff] }
  0xeb   : > { %2295 = vmatprep.subr.mxu1 %v798_v58  ;;  %1596 = vmatprep.mubr.f32.mxu0 %v872_v60  ;;  %v942_v58 = vld [vmem:[%s2567_s18 + $0x398] sm:$0xff]  ;;  %v941_v60 = vld [vmem:[%s2567_s18 + $0x390] sm:$0xff] }
  0xec   : > { %1793 = vmatprep.mubr.f32.mxu1 %v874_v61  ;;  %1911 = vmatpush1.msra.mxu0 %v797_v62  ;;  %v943_v61 = vld [vmem:[%s2567_s18 + $0x3a0] sm:$0xff] }
  0xed   : > { %2321 = vmatpush1.msra.mxu1 %v797_v62  ;;  %1597 = vmatmul.mubr.f32.gmra.mxu0 %v871_v0  ;;  %v780_v62 = vmax.f32 %v472_v56, 0.0  ;;  %v470_v0 = vld [vmem:[%s4132_s0 + $0x818] sm:$0xff]  ;;  %v1011_v56 = vld [vmem:[%s2567_s18 + $0x5c0] sm:$0xff] }
  0xee   : > { %1794 = vmatmul.mubr.f32.gmra.mxu1 %v873_v1  ;;  %1912 = vmatprep.subr.mxu0 %v796_v2  ;;  %v469_v1 = vld [vmem:[%s4132_s0 + $0x810] sm:$0xff] }
  0xef   : > { %2296 = vmatprep.subr.mxu1 %v796_v2  ;;  %1913 = vmatpush1.msra.mxu0 %v795_v3  ;;  %v952_v2 = vld [vmem:[%s2567_s18 + $0x3e8] sm:$0xff] }
  0xf0   : > { %2322 = vmatpush1.msra.mxu1 %v795_v3  ;;  %1602 = vmatprep.mubr.f32.mxu0 %v882_v6  ;;  %v954_v3 = vld [vmem:[%s2567_s18 + $0x3f8] sm:$0xff]  ;;  %v778_v6 = vmax.f32 %v470_v0, 0.0 }
  0xf1   : > { %1799 = vmatprep.mubr.f32.mxu1 %v884_v7  ;;  %1603 = vmatmul.mubr.f32.gmra.mxu0 %v881_v8  ;;  %v468_v7 = vld [vmem:[%s4132_s0 + $0x808] sm:$0xff]  ;;  %v777_v8 = vmax.f32 %v469_v1, 0.0 }
  0xf2   : > { %1800 = vmatmul.mubr.f32.gmra.mxu1 %v883_v9  ;;  %1914 = vmatprep.subr.mxu0 %v794_v10  ;;  %v467_v9 = vld [vmem:[%s4132_s0 + $0x800] sm:$0xff]  ;;  %v776_v12 = vmax.f32 %v468_v7, 0.0  ;;  %v504_v1 = vld [vmem:[%s4132_s0 + $0x928] sm:$0xff]  ;;  %v502_v7 = vld [vmem:[%s4132_s0 + $0x918] sm:$0xff] }
  0xf3   : > { %2297 = vmatprep.subr.mxu1 %v794_v10  ;;  %1915 = vmatpush1.msra.mxu0 %v793_v11  ;;  %v962_v10 = vld [vmem:[%s2567_s18 + $0x438] sm:$0xff] }
  0xf4   : > { %2323 = vmatpush1.msra.mxu1 %v793_v11  ;;  %1608 = vmatprep.mubr.f32.mxu0 %v892_v14  ;;  %v964_v11 = vld [vmem:[%s2567_s18 + $0x448] sm:$0xff]  ;;  %v961_v14 = vld [vmem:[%s2567_s18 + $0x430] sm:$0xff] }
  0xf5   : > { %1805 = vmatprep.mubr.f32.mxu1 %v894_v15  ;;  %1609 = vmatmul.mubr.f32.gmra.mxu0 %v891_v16  ;;  %v963_v15 = vld [vmem:[%s2567_s18 + $0x440] sm:$0xff]  ;;  %v775_v16 = vmax.f32 %v467_v9, 0.0  ;;  %v1034_v9 = vld [vmem:[%s2567_s18 + $0x678] sm:$0xff] }
  0xf6   : > { %1806 = vmatmul.mubr.f32.gmra.mxu1 %v893_v17  ;;  %1916 = vmatprep.subr.mxu0 %v792_v18  ;;  %v517_v17 = vld [vmem:[%s4132_s0 + $0x990] sm:$0xff] }
  0xf7   : > { %2298 = vmatprep.subr.mxu1 %v792_v18  ;;  %1917 = vmatpush1.msra.mxu0 %v791_v19  ;;  %v972_v18 = vld [vmem:[%s2567_s18 + $0x488] sm:$0xff] }
  0xf8   : > { %2324 = vmatpush1.msra.mxu1 %v791_v19  ;;  %1614 = vmatprep.mubr.f32.mxu0 %v902_v22  ;;  %v974_v19 = vld [vmem:[%s2567_s18 + $0x498] sm:$0xff]  ;;  %v971_v22 = vld [vmem:[%s2567_s18 + $0x480] sm:$0xff] }
  0xf9   : > { %1811 = vmatprep.mubr.f32.mxu1 %v904_v23  ;;  %1615 = vmatmul.mubr.f32.gmra.mxu0 %v901_v24  ;;  %v973_v23 = vld [vmem:[%s2567_s18 + $0x490] sm:$0xff]  ;;  %v825_v24 = vmax.f32 %v517_v17, 0.0 }
  0xfa   : > { %1812 = vmatmul.mubr.f32.gmra.mxu1 %v903_v25  ;;  %1918 = vmatprep.subr.mxu0 %v790_v26  ;;  %v515_v25 = vld [vmem:[%s4132_s0 + $0x980] sm:$0xff] }
  0xfb   : > { %2299 = vmatprep.subr.mxu1 %v790_v26  ;;  %1919 = vmatpush1.msra.mxu0 %v789_v28  ;;  %v824_v26 = vmax.f32 %v516_v21, 0.0  ;;  %v1042_v21 = vld [vmem:[%s2567_s18 + $0x6b8] sm:$0xff] }
  0xfc   : > { %2325 = vmatpush1.msra.mxu1 %v789_v28  ;;  %1620 = vmatprep.mubr.f32.mxu0 %v912_v30  ;;  %v982_v28 = vld [vmem:[%s2567_s18 + $0x4d8] sm:$0xff]  ;;  %v823_v30 = vmax.f32 %v515_v25, 0.0 }
  0xfd   : > { %1817 = vmatprep.mubr.f32.mxu1 %v914_v31  ;;  %1920 = vmatprep.subr.mxu0 %v788_v32  ;;  %v513_v31 = vld [vmem:[%s4132_s0 + $0x970] sm:$0xff] }
  0xfe   : > { %2300 = vmatprep.subr.mxu1 %v788_v32  ;;  %1621 = vmatmul.mubr.f32.gmra.mxu0 %v911_v34  ;;  %v981_v32 = vld [vmem:[%s2567_s18 + $0x4d0] sm:$0xff]  ;;  %v822_v34 = vmax.f32 %v514_v27, 0.0  ;;  %v1043_v27 = vld [vmem:[%s2567_s18 + $0x6c0] sm:$0xff] }
  0xff   : > { %1818 = vmatmul.mubr.f32.gmra.mxu1 %v913_v35  ;;  %1921 = vmatpush1.msra.mxu0 %v787_v36  ;;  %v821_v35 = vmax.f32 %v513_v31, 0.0 }
 0x100   : > { %2326 = vmatpush1.msra.mxu1 %v787_v36  ;;  %1922 = vmatprep.subr.mxu0 %v786_v38  ;;  %v512_v36 = vld [vmem:[%s4132_s0 + $0x968] sm:$0xff] }
 0x101   : > { %2301 = vmatprep.subr.mxu1 %v786_v38  ;;  %1626 = vmatprep.mubr.f32.mxu0 %v922_v40  ;;  %v992_v38 = vld [vmem:[%s2567_s18 + $0x528] sm:$0xff]  ;;  %v991_v40 = vld [vmem:[%s2567_s18 + $0x520] sm:$0xff] }
 0x102   : > { %1823 = vmatprep.mubr.f32.mxu1 %v924_v41  ;;  %1923 = vmatpush1.msra.mxu0 %v785_v42  ;;  %v993_v41 = vld [vmem:[%s2567_s18 + $0x530] sm:$0xff] }
 0x103   : > { %2327 = vmatpush1.msra.mxu1 %v785_v42  ;;  %1627 = vmatmul.mubr.f32.gmra.mxu0 %v921_v44  ;;  %v820_v42 = vmax.f32 %v512_v36, 0.0  ;;  %v510_v44 = vld [vmem:[%s4132_s0 + $0x958] sm:$0xff] }
 0x104   : > { %1824 = vmatmul.mubr.f32.gmra.mxu1 %v923_v45  ;;  %1924 = vmatprep.subr.mxu0 %v784_v46  ;;  %v509_v45 = vld [vmem:[%s4132_s0 + $0x950] sm:$0xff]  ;;  %v946_v36 = vld [vmem:[%s2567_s18 + $0x3b8] sm:$0xff] }
 0x105   : > { %2302 = vmatprep.subr.mxu1 %v784_v46  ;;  %1632 = vmatprep.mubr.f32.mxu0 %v932_v48  ;;  %v1002_v46 = vld [vmem:[%s2567_s18 + $0x578] sm:$0xff]  ;;  %v1001_v48 = vld [vmem:[%s2567_s18 + $0x570] sm:$0xff]  ;;  %v817_v51 = vmax.f32 %v509_v45, 0.0 }
 0x106   : > { %1829 = vmatprep.mubr.f32.mxu1 %v934_v49  ;;  %1925 = vmatpush1.msra.mxu0 %v783_v50  ;;  %v1003_v49 = vld [vmem:[%s2567_s18 + $0x580] sm:$0xff] }
 0x107   : > { %2328 = vmatpush1.msra.mxu1 %v783_v50  ;;  %1633 = vmatmul.mubr.f32.gmra.mxu0 %v931_v52  ;;  %v818_v50 = vmax.f32 %v510_v44, 0.0  ;;  %v508_v52 = vld [vmem:[%s4132_s0 + $0x948] sm:$0xff] }
 0x108   : > { %1830 = vmatmul.mubr.f32.gmra.mxu1 %v933_v53  ;;  %1926 = vmatprep.subr.mxu0 %v782_v54  ;;  %v507_v53 = vld [vmem:[%s4132_s0 + $0x940] sm:$0xff] }
 0x109   : > { %2303 = vmatprep.subr.mxu1 %v782_v54  ;;  %1927 = vmatpush1.msra.mxu0 %v781_v55  ;;  %v1012_v54 = vld [vmem:[%s2567_s18 + $0x5c8] sm:$0xff] }
 0x10a   : > { %2329 = vmatpush1.msra.mxu1 %v781_v55  ;;  %1638 = vmatprep.mubr.f32.mxu0 %v942_v58  ;;  %v1014_v55 = vld [vmem:[%s2567_s18 + $0x5d8] sm:$0xff]  ;;  %v816_v58 = vmax.f32 %v508_v52, 0.0 }
 0x10b   : > { %1835 = vmatprep.mubr.f32.mxu1 %v944_v59  ;;  %1639 = vmatmul.mubr.f32.gmra.mxu0 %v941_v60  ;;  %v506_v59 = vld [vmem:[%s4132_s0 + $0x938] sm:$0xff]  ;;  %v815_v60 = vmax.f32 %v507_v53, 0.0 }
 0x10c   : > { %1836 = vmatmul.mubr.f32.gmra.mxu1 %v943_v61  ;;  %1928 = vmatprep.subr.mxu0 %v780_v62  ;;  %v505_v61 = vld [vmem:[%s4132_s0 + $0x930] sm:$0xff]  ;;  %v814_v0 = vmax.f32 %v506_v59, 0.0  ;;  %v866_v59 = vld [vmem:[%s2567_s18 + $0x138] sm:$0xff] }
 0x10d   : > { %2304 = vmatprep.subr.mxu1 %v780_v62  ;;  %1929 = vmatpush1.msra.mxu0 %v779_v63  ;;  %v1022_v62 = vld [vmem:[%s2567_s18 + $0x618] sm:$0xff] }
 0x10e   : > { %2330 = vmatpush1.msra.mxu1 %v779_v63  ;;  %1644 = vmatprep.mubr.f32.mxu0 %v952_v2  ;;  %v1024_v63 = vld [vmem:[%s2567_s18 + $0x628] sm:$0xff]  ;;  %v1021_v2 = vld [vmem:[%s2567_s18 + $0x610] sm:$0xff] }
 0x10f   : > { %1841 = vmatprep.mubr.f32.mxu1 %v954_v3  ;;  %1645 = vmatmul.mubr.f32.gmra.mxu0 %v951_v4  ;;  %v1023_v3 = vld [vmem:[%s2567_s18 + $0x620] sm:$0xff]  ;;  %v813_v4 = vmax.f32 %v505_v61, 0.0 }
 0x110   : > { %1842 = vmatmul.mubr.f32.gmra.mxu1 %v953_v5  ;;  %1930 = vmatprep.subr.mxu0 %v778_v6  ;;  %v503_v5 = vld [vmem:[%s4132_s0 + $0x920] sm:$0xff] }
 0x111   : > { %2305 = vmatprep.subr.mxu1 %v778_v6  ;;  %1931 = vmatpush1.msra.mxu0 %v777_v8  ;;  %v812_v6 = vmax.f32 %v504_v1, 0.0  ;;  %v975_v1 = vld [vmem:[%s2567_s18 + $0x4a0] sm:$0xff] }
 0x112   : > { %2331 = vmatpush1.msra.mxu1 %v777_v8  ;;  %1650 = vmatprep.mubr.f32.mxu0 %v962_v10  ;;  %v1032_v8 = vld [vmem:[%s2567_s18 + $0x668] sm:$0xff]  ;;  %v811_v10 = vmax.f32 %v503_v5, 0.0 }
 0x113   : > { %1847 = vmatprep.mubr.f32.mxu1 %v964_v11  ;;  %1932 = vmatprep.subr.mxu0 %v776_v12  ;;  %v501_v11 = vld [vmem:[%s4132_s0 + $0x910] sm:$0xff] }
 0x114   : > { %2306 = vmatprep.subr.mxu1 %v776_v12  ;;  %1651 = vmatmul.mubr.f32.gmra.mxu0 %v961_v14  ;;  %v1031_v14 = vld [vmem:[%s2567_s18 + $0x660] sm:$0xff] }
 0x115   : > { %1848 = vmatmul.mubr.f32.gmra.mxu1 %v963_v15  ;;  %1933 = vmatpush1.msra.mxu0 %v775_v16  ;;  %v1033_v15 = vld [vmem:[%s2567_s18 + $0x670] sm:$0xff] }
 0x116   : > { %2332 = vmatpush1.msra.mxu1 %v775_v16  ;;  %1656 = vmatprep.mubr.f32.mxu0 %v972_v18  ;;  %v810_v16 = vmax.f32 %v502_v7, 0.0  ;;  %v500_v18 = vld [vmem:[%s4132_s0 + $0x908] sm:$0xff] }
 0x117   : > { %1853 = vmatprep.mubr.f32.mxu1 %v974_v19  ;;  %1946 = vmatprep.subr.mxu0 %v826_v20 }
 0x118   : > { %2307 = vmatprep.subr.mxu1 %v826_v20  ;;  %1657 = vmatmul.mubr.f32.gmra.mxu0 %v971_v22  ;;  %v1044_v22 = vld [vmem:[%s2567_s18 + $0x6c8] sm:$0xff] }
 0x119   : > { %1854 = vmatmul.mubr.f32.gmra.mxu1 %v973_v23  ;;  %1947 = vmatpush2.msra.mxu0 %v825_v24  ;;  %v809_v23 = vmax.f32 %v501_v11, 0.0  ;;  %v985_v11 = vld [vmem:[%s2567_s18 + $0x4f0] sm:$0xff] }
 0x11a   : > { %2333 = vmatpush2.msra.mxu1 %v825_v24  ;;  %1948 = vmatprep.subr.mxu0 %v824_v26  ;;  %v499_v24 = vld [vmem:[%s4132_s0 + $0x900] sm:$0xff] }
 0x11b   : > { %2308 = vmatprep.subr.mxu1 %v824_v26  ;;  %1662 = vmatprep.mubr.f32.mxu0 %v982_v28  ;;  %v1041_v26 = vld [vmem:[%s2567_s18 + $0x6b0] sm:$0xff]  ;;  %v808_v28 = vmax.f32 %v500_v18, 0.0  ;;  %v807_v31 = vmax.f32 %v499_v24, 0.0 }
 0x11c   : > { %1859 = vmatprep.mubr.f32.mxu1 %v984_v29  ;;  %1949 = vmatpush2.msra.mxu0 %v823_v30 }
 0x11d   : > { %2334 = vmatpush2.msra.mxu1 %v823_v30  ;;  %1663 = vmatmul.mubr.f32.gmra.mxu0 %v981_v32 }
 0x11e   : > { %1860 = vmatmul.mubr.f32.gmra.mxu1 %v983_v33  ;;  %1950 = vmatprep.subr.mxu0 %v822_v34 }
 0x11f   : > { %2309 = vmatprep.subr.mxu1 %v822_v34  ;;  %1951 = vmatpush2.msra.mxu0 %v821_v35 }
 0x120   : > { %2335 = vmatpush2.msra.mxu1 %v821_v35  ;;  %1668 = vmatprep.mubr.f32.mxu0 %v992_v38  ;;  %v836_v35 = vld [vmem:[%s2567_s18 + $0x48] sm:$0xff]  ;;  %v835_v38 = vld [vmem:[%s2567_s18 + $0x40] sm:$0xff] }
 0x121   : > { %1865 = vmatprep.mubr.f32.mxu1 %v994_v39  ;;  %1669 = vmatmul.mubr.f32.gmra.mxu0 %v991_v40  ;;  %v945_v39 = vld [vmem:[%s2567_s18 + $0x3b0] sm:$0xff]  ;;  %v846_v40 = vld [vmem:[%s2567_s18 + $0x98] sm:$0xff] }
 0x122   : > { %1866 = vmatmul.mubr.f32.gmra.mxu1 %v993_v41  ;;  %1952 = vmatprep.subr.mxu0 %v820_v42  ;;  %v956_v41 = vld [vmem:[%s2567_s18 + $0x408] sm:$0xff] }
 0x123   : > { %2310 = vmatprep.subr.mxu1 %v820_v42  ;;  %1953 = vmatpush2.msra.mxu0 %v819_v43 }
 0x124   : > { %2336 = vmatpush2.msra.mxu1 %v819_v43  ;;  %1674 = vmatprep.mubr.f32.mxu0 %v1002_v46 }
 0x125   : > { %1871 = vmatprep.mubr.f32.mxu1 %v1004_v47  ;;  %1675 = vmatmul.mubr.f32.gmra.mxu0 %v1001_v48  ;;  %v845_v47 = vld [vmem:[%s2567_s18 + $0x90] sm:$0xff]  ;;  %v955_v48 = vld [vmem:[%s2567_s18 + $0x400] sm:$0xff] }
 0x126   : > { %1872 = vmatmul.mubr.f32.gmra.mxu1 %v1003_v49  ;;  %1954 = vmatprep.subr.mxu0 %v818_v50 }
 0x127   : > { %2311 = vmatprep.subr.mxu1 %v818_v50  ;;  %1955 = vmatpush2.msra.mxu0 %v817_v51  ;;  %v856_v50 = vld [vmem:[%s2567_s18 + $0xe8] sm:$0xff] }
 0x128   : > { %2337 = vmatpush2.msra.mxu1 %v817_v51  ;;  %1680 = vmatprep.mubr.f32.mxu0 %v1012_v54  ;;  %v966_v51 = vld [vmem:[%s2567_s18 + $0x458] sm:$0xff] }
 0x129   : > { %1877 = vmatprep.mubr.f32.mxu1 %v1014_v55  ;;  %1681 = vmatmul.mubr.f32.gmra.mxu0 %v1011_v56  ;;  %v855_v55 = vld [vmem:[%s2567_s18 + $0xe0] sm:$0xff]  ;;  %v965_v56 = vld [vmem:[%s2567_s18 + $0x450] sm:$0xff] }
 0x12a   : > { %1878 = vmatmul.mubr.f32.gmra.mxu1 %v1013_v57  ;;  %1956 = vmatprep.subr.mxu0 %v816_v58 }
 0x12b   : > { %2312 = vmatprep.subr.mxu1 %v816_v58  ;;  %1957 = vmatpush2.msra.mxu0 %v815_v60 }
 0x12c   : > { %2338 = vmatpush2.msra.mxu1 %v815_v60  ;;  %1686 = vmatprep.mubr.f32.mxu0 %v1022_v62  ;;  %v976_v60 = vld [vmem:[%s2567_s18 + $0x4a8] sm:$0xff] }
 0x12d   : > { %1883 = vmatprep.mubr.f32.mxu1 %v1024_v63  ;;  %1958 = vmatprep.subr.mxu0 %v814_v0 }
 0x12e   : > { %2313 = vmatprep.subr.mxu1 %v814_v0  ;;  %1687 = vmatmul.mubr.f32.gmra.mxu0 %v1021_v2  ;;  %v865_v0 = vld [vmem:[%s2567_s18 + $0x130] sm:$0xff] }
 0x12f   : > { %1884 = vmatmul.mubr.f32.gmra.mxu1 %v1023_v3  ;;  %1959 = vmatpush2.msra.mxu0 %v813_v4  ;;  %v1180_v12 = vpop.f32.mrf.mxu0  ;;  %v876_v3 = vld [vmem:[%s2567_s18 + $0x188] sm:$0xff] }
 0x130   : > { %2339 = vmatpush2.msra.mxu1 %v813_v4  ;;  %v1377_v13 = vpop.f32.mrf.mxu1  ;;  %1960 = vmatprep.subr.mxu0 %v812_v6  ;;  %v986_v4 = vld [vmem:[%s2567_s18 + $0x4f8] sm:$0xff] }
 0x131   : > { %2314 = vmatprep.subr.mxu1 %v812_v6  ;;  %v3663_v17 = vadd.f32 %v1377_v13, %v1180_v12  ;;  %1692 = vmatprep.mubr.f32.mxu0 %v1032_v8  ;;  %v1182_v19 = vpop.f32.mrf.mxu0  ;;  %v886_v13 = vld [vmem:[%s2567_s18 + $0x1d8] sm:$0xff] }
 0x132   : > { %1889 = vmatprep.mubr.f32.mxu1 %v1034_v9  ;;  %v1379_v20 = vpop.f32.mrf.mxu1  ;;  %1961 = vmatpush2.msra.mxu0 %v811_v10 }
 0x133   : > { %2340 = vmatpush2.msra.mxu1 %v811_v10  ;;  %v3673_v25 = vadd.f32 %v1379_v20, %v1182_v19  ;;  %1693 = vmatmul.mubr.f32.gmra.mxu0 %v1031_v14  ;;  %v875_v10 = vld [vmem:[%s2567_s18 + $0x180] sm:$0xff]  ;;  %v996_v14 = vld [vmem:[%s2567_s18 + $0x548] sm:$0xff]  ;;  %v885_v19 = vld [vmem:[%s2567_s18 + $0x1d0] sm:$0xff] }
 0x134   : > { %1890 = vmatmul.mubr.f32.gmra.mxu1 %v1033_v15  ;;  %1962 = vmatprep.subr.mxu0 %v810_v16  ;;  %v1186_v29 = vpop.f32.mrf.mxu0  ;;  %v995_v20 = vld [vmem:[%s2567_s18 + $0x540] sm:$0xff] }
 0x135   : > { %2315 = vmatprep.subr.mxu1 %v810_v16  ;;  %v1383_v30 = vpop.f32.mrf.mxu1  ;;  %1698 = vmatprep.mubr.f32.mxu0 %v1042_v21  ;;  %v896_v21 = vld [vmem:[%s2567_s18 + $0x228] sm:$0xff] }
 0x136   : > { %1895 = vmatprep.mubr.f32.mxu1 %v1044_v22  ;;  %v3677_v32 = vadd.f32 %v1383_v30, %v1186_v29  ;;  %1963 = vmatpush2.msra.mxu0 %v809_v23  ;;  %v1188_v33 = vpop.f32.mrf.mxu0  ;;  %v1006_v22 = vld [vmem:[%s2567_s18 + $0x598] sm:$0xff]  ;;  %v895_v29 = vld [vmem:[%s2567_s18 + $0x220] sm:$0xff]  ;;  %v1005_v30 = vld [vmem:[%s2567_s18 + $0x590] sm:$0xff] }
 0x137   : > { %2341 = vmatpush2.msra.mxu1 %v809_v23  ;;  %v1385_v34 = vpop.f32.mrf.mxu1  ;;  %1699 = vmatmul.mubr.f32.gmra.mxu0 %v1041_v26 }
 0x138   : > { %1896 = vmatmul.mubr.f32.gmra.mxu1 %v1043_v27  ;;  %v3681_v37 = vadd.f32 %v1385_v34, %v1188_v33  ;;  %1964 = vmatprep.subr.mxu0 %v808_v28  ;;  %v906_v33 = vld [vmem:[%s2567_s18 + $0x278] sm:$0xff]  ;;  %v1016_v34 = vld [vmem:[%s2567_s18 + $0x5e8] sm:$0xff] }
 0x139   : > { %2316 = vmatprep.subr.mxu1 %v808_v28  ;;  %1965 = vmatpush2.msra.mxu0 %v807_v31  ;;  %v1192_v42 = vpop.f32.mrf.mxu0 }
 0x13a   : > { %2342 = vmatpush2.msra.mxu1 %v807_v31  ;;  %v1389_v43 = vpop.f32.mrf.mxu1  ;;  %2266 = vmatprep.mubr.msk.f32.mxu0 %vm1047_vm0, %v836_v35 }
 0x13b   : > { %2277 = vmatprep.mubr.msk.f32.mxu1 %vm1047_vm0, %v946_v36  ;;  %v3689_v44 = vadd.f32 %v1389_v43, %v1192_v42  ;;  %1967 = vmatmul.mubr.f32.vlgmr.msra.gmra.mxu0 %v835_v38  ;;  %v1194_v45 = vpop.f32.mrf.mxu0  ;;  %v1015_v42 = vld [vmem:[%s2567_s18 + $0x5e0] sm:$0xff] }
 0x13c   : > { %2033 = vmatmul.mubr.f32.vlgmr.msra.gmra.mxu1 %v945_v39  ;;  %v1391_v46 = vpop.f32.mrf.mxu1  ;;  %2267 = vmatprep.mubr.msk.f32.mxu0 %vm1047_vm0, %v846_v40 }
 0x13d   : > { %2278 = vmatprep.mubr.msk.f32.mxu1 %vm1047_vm0, %v956_v41  ;;  %v3695_v49 = vadd.f32 %v1391_v46, %v1194_v45  ;;  %v905_v41 = vld [vmem:[%s2567_s18 + $0x270] sm:$0xff]  ;;  %v916_v45 = vld [vmem:[%s2567_s18 + $0x2c8] sm:$0xff]  ;;  %v1026_v46 = vld [vmem:[%s2567_s18 + $0x638] sm:$0xff] }
 0x13e   : > { %v1198_v52 = vpop.f32.mrf.mxu0 }
 0x13f   : > { %v1395_v53 = vpop.f32.mrf.mxu1  ;;  %1973 = vmatmul.mubr.f32.gmra.mxu0 %v845_v47 }
 0x140   : > { %2039 = vmatmul.mubr.f32.gmra.mxu1 %v955_v48  ;;  %v3699_v54 = vadd.f32 %v1395_v53, %v1198_v52  ;;  %2268 = vmatprep.mubr.msk.f32.mxu0 %vm1047_vm0, %v856_v50  ;;  %v1200_v57 = vpop.f32.mrf.mxu0  ;;  %v1025_v52 = vld [vmem:[%s2567_s18 + $0x630] sm:$0xff] }
 0x141   : > { %2279 = vmatprep.mubr.msk.f32.mxu1 %vm1047_vm0, %v966_v51  ;;  %v1397_v58 = vpop.f32.mrf.mxu1  ;;  %v915_v51 = vld [vmem:[%s2567_s18 + $0x2c0] sm:$0xff] }
 0x142   : > { %v3707_v61 = vadd.f32 %v1397_v58, %v1200_v57  ;;  %v1036_v57 = vld [vmem:[%s2567_s18 + $0x688] sm:$0xff] }
 0x143   : > { %1979 = vmatmul.mubr.f32.gmra.mxu0 %v855_v55  ;;  %v1204_v62 = vpop.f32.mrf.mxu0 }
 0x144   : > { %2045 = vmatmul.mubr.f32.gmra.mxu1 %v965_v56  ;;  %v1401_v63 = vpop.f32.mrf.mxu1  ;;  %2269 = vmatprep.mubr.msk.f32.mxu0 %vm1047_vm0, %v866_v59  ;;  %v926_v56 = vld [vmem:[%s2567_s18 + $0x318] sm:$0xff] }
 0x145   : > { %2280 = vmatprep.mubr.msk.f32.mxu1 %vm1047_vm0, %v976_v60  ;;  %v3713_v2 = vadd.f32 %v1401_v63, %v1204_v62  ;;  %v1206_v5 = vpop.f32.mrf.mxu0  ;;  %v925_v62 = vld [vmem:[%s2567_s18 + $0x310] sm:$0xff]  ;;  %v1035_v63 = vld [vmem:[%s2567_s18 + $0x680] sm:$0xff] }
 0x146   : > { %v1403_v6 = vpop.f32.mrf.mxu1 }
 0x147   : > { %v3717_v7 = vadd.f32 %v1403_v6, %v1206_v5  ;;  %1985 = vmatmul.mubr.f32.gmra.mxu0 %v865_v0  ;;  %v1210_v8 = vpop.f32.mrf.mxu0 }
 0x148   : > { %2051 = vmatmul.mubr.f32.gmra.mxu1 %v975_v1  ;;  %v1407_v9 = vpop.f32.mrf.mxu1  ;;  %2270 = vmatprep.mubr.msk.f32.mxu0 %vm1047_vm0, %v876_v3  ;;  %v936_v1 = vld [vmem:[%s2567_s18 + $0x368] sm:$0xff]  ;;  %v1046_v3 = vld [vmem:[%s2567_s18 + $0x6d8] sm:$0xff] }
 0x149   : > { %2281 = vmatprep.mubr.msk.f32.mxu1 %vm1047_vm0, %v986_v4  ;;  %v3723_v12 = vadd.f32 %v1407_v9, %v1210_v8  ;;  %v1212_v15 = vpop.f32.mrf.mxu0  ;;  %v935_v8 = vld [vmem:[%s2567_s18 + $0x360] sm:$0xff]  ;;  %v1045_v9 = vld [vmem:[%s2567_s18 + $0x6d0] sm:$0xff]  ;;  %s200_s18 = smul.u32 22, %s2474_s12 }
 0x14a   : > { %v1409_v16 = vpop.f32.mrf.mxu1 }
 0x14b   : > { %v3727_v18 = vadd.f32 %v1409_v16, %v1212_v15  ;;  %1991 = vmatmul.mubr.f32.gmra.mxu0 %v875_v10  ;;  %p203_p7 = scmp.lt.s32.totalorder %s200_s18, 153 }
 0x14c   : > { %2057 = vmatmul.mubr.f32.gmra.mxu1 %v985_v11  ;;  %2271 = vmatprep.mubr.msk.f32.mxu0 %vm1047_vm0, %v886_v13 }
 0x14d   : > { %2282 = vmatprep.mubr.msk.f32.mxu1 %vm1047_vm0, %v996_v14  ;;  %v1216_v23 = vpop.f32.mrf.mxu0  ;;  %s4207_s18 = smov (!%p203_p7, %s200_s18), 153 }
 0x14e   : > { %v1413_v24 = vpop.f32.mrf.mxu1  ;;  %s2290_s12 = sshll.u32 %s4207_s18, 4 }
 0x14f   : > { %v3735_v26 = vadd.f32 %v1413_v24, %v1216_v23  ;;  %1997 = vmatmul.mubr.f32.gmra.mxu0 %v885_v19  ;;  %v1218_v27 = vpop.f32.mrf.mxu0  ;;  %s3970_s15 = scalar_lea.vmem %s4134_s2, %s2290_s12 }
 0x150   : > { %2063 = vmatmul.mubr.f32.gmra.mxu1 %v995_v20  ;;  %v1415_v28 = vpop.f32.mrf.mxu1  ;;  %2272 = vmatprep.mubr.msk.f32.mxu0 %vm1047_vm0, %v896_v21 }
 0x151   : > { %2283 = vmatprep.mubr.msk.f32.mxu1 %vm1047_vm0, %v1006_v22  ;;  %v3741_v31 = vadd.f32 %v1415_v28, %v1218_v27  ;;  %v1222_v35 = vpop.f32.mrf.mxu0 }
 0x152   : > { %v1419_v36 = vpop.f32.mrf.mxu1 }
 0x153   : > { %v3745_v38 = vadd.f32 %v1419_v36, %v1222_v35  ;;  %2003 = vmatmul.mubr.f32.gmra.mxu0 %v895_v29  ;;  %v1224_v39 = vpop.f32.mrf.mxu0 }
 0x154   : > { %2069 = vmatmul.mubr.f32.gmra.mxu1 %v1005_v30  ;;  %v1421_v40 = vpop.f32.mrf.mxu1  ;;  %2273 = vmatprep.mubr.msk.f32.mxu0 %vm1047_vm0, %v906_v33 }
 0x155   : > { %2284 = vmatprep.mubr.msk.f32.mxu1 %vm1047_vm0, %v1016_v34  ;;  %v3751_v43 = vadd.f32 %v1421_v40, %v1224_v39 }
 0x156   : > { %v1228_v47 = vpop.f32.mrf.mxu0 }
 0x157   : > { %v1425_v48 = vpop.f32.mrf.mxu1  ;;  %2009 = vmatmul.mubr.f32.gmra.mxu0 %v905_v41 }
 0x158   : > { %2075 = vmatmul.mubr.f32.gmra.mxu1 %v1015_v42  ;;  %v3755_v50 = vadd.f32 %v1425_v48, %v1228_v47  ;;  %2274 = vmatprep.mubr.msk.f32.mxu0 %vm1047_vm0, %v916_v45  ;;  %v1230_v53 = vpop.f32.mrf.mxu0 }
 0x159   : > { %2285 = vmatprep.mubr.msk.f32.mxu1 %vm1047_vm0, %v1026_v46  ;;  %v1427_v55 = vpop.f32.mrf.mxu1 }
 0x15a   : > { %v3763_v58 = vadd.f32 %v1427_v55, %v1230_v53 }
 0x15b   : > { %2015 = vmatmul.mubr.f32.gmra.mxu0 %v915_v51  ;;  %v1234_v59 = vpop.f32.mrf.mxu0 }
 0x15c   : > { %2081 = vmatmul.mubr.f32.gmra.mxu1 %v1025_v52  ;;  %v1431_v60 = vpop.f32.mrf.mxu1  ;;  %2275 = vmatprep.mubr.msk.f32.mxu0 %vm1047_vm0, %v926_v56 }
 0x15d   : > { %2286 = vmatprep.mubr.msk.f32.mxu1 %vm1047_vm0, %v1036_v57  ;;  %v3769_v0 = vadd.f32 %v1431_v60, %v1234_v59  ;;  %v1236_v4 = vpop.f32.mrf.mxu0 }
 0x15e   : > { %v1433_v5 = vpop.f32.mrf.mxu1 }
 0x15f   : > { %v3773_v6 = vadd.f32 %v1433_v5, %v1236_v4  ;;  %2021 = vmatmul.mubr.f32.gmra.mxu0 %v925_v62 }
 0x160   : > { %2087 = vmatmul.mubr.f32.gmra.mxu1 %v1035_v63  ;;  %2276 = vmatprep.mubr.msk.f32.mxu0 %vm1047_vm0, %v936_v1  ;;  %v1240_v10 = vpop.f32.mrf.mxu0 }
 0x161   : > { %2287 = vmatprep.mubr.msk.f32.mxu1 %vm1047_vm0, %v1046_v3  ;;  %v1437_v11 = vpop.f32.mrf.mxu1 }
 0x162   : > { %v3779_v13 = vadd.f32 %v1437_v11, %v1240_v10  ;;  %v1242_v14 = vpop.f32.mrf.mxu0 }
 0x163   : > { %v1439_v15 = vpop.f32.mrf.mxu1  ;;  %2027 = vmatmul.mubr.f32.gmra.mxu0 %v935_v8 }
 0x164   : > { %2093 = vmatmul.mubr.f32.gmra.mxu1 %v1045_v9  ;;  %v3781_v16 = vadd.f32 %v1439_v15, %v1242_v14 }
 0x165   : > { %v1246_v19 = vpop.f32.mrf.mxu0 }
 0x166   : > { %v1443_v20 = vpop.f32.mrf.mxu1 }
 0x167   : > { %v3783_v21 = vadd.f32 %v1443_v20, %v1246_v19  ;;  %v1248_v22 = vpop.f32.mrf.mxu0 }
 0x168   : > { %v1445_v23 = vpop.f32.mrf.mxu1 }
 0x169   : > { %v3785_v24 = vadd.f32 %v1445_v23, %v1248_v22 }
 0x16a   : > { %v1252_v27 = vpop.f32.mrf.mxu0 }
 0x16b   : > { %v1449_v28 = vpop.f32.mrf.mxu1 }
 0x16c   : > { %v3787_v29 = vadd.f32 %v1449_v28, %v1252_v27  ;;  %v1254_v30 = vpop.f32.mrf.mxu0 }
 0x16d   : > { %v1451_v33 = vpop.f32.mrf.mxu1 }
 0x16e   : > { %v3789_v34 = vadd.f32 %v1451_v33, %v1254_v30 }
 0x16f   : > { %v1258_v35 = vpop.f32.mrf.mxu0 }
 0x170   : > { %v1455_v36 = vpop.f32.mrf.mxu1 }
 0x171   : > { %v3791_v39 = vadd.f32 %v1455_v36, %v1258_v35  ;;  %v1260_v40 = vpop.f32.mrf.mxu0 }
 0x172   : > { %v1457_v41 = vpop.f32.mrf.mxu1 }
 0x173   : > { %v3793_v42 = vadd.f32 %v1457_v41, %v1260_v40 }
 0x174   : > { %v1264_v45 = vpop.f32.mrf.mxu0 }
 0x175   : > { %v1461_v46 = vpop.f32.mrf.mxu1 }
 0x176   : > { %v3795_v47 = vadd.f32 %v1461_v46, %v1264_v45  ;;  %v1266_v48 = vpop.f32.mrf.mxu0 }
 0x177   : > { %v1463_v51 = vpop.f32.mrf.mxu1 }
 0x178   : > { %v3797_v52 = vadd.f32 %v1463_v51, %v1266_v48 }
 0x179   : > { %v1270_v53 = vpop.f32.mrf.mxu0 }
 0x17a   : > { %v1467_v55 = vpop.f32.mrf.mxu1 }
 0x17b   : > { %v3799_v56 = vadd.f32 %v1467_v55, %v1270_v53  ;;  %v1272_v57 = vpop.f32.mrf.mxu0 }
 0x17c   : > { %v1469_v59 = vpop.f32.mrf.mxu1 }
 0x17d   : > { %v3801_v60 = vadd.f32 %v1469_v59, %v1272_v57  ;;  %v1276_v62 = vpop.f32.mrf.mxu0 }
 0x17e   : > { %v1473_v63 = vpop.f32.mrf.mxu1 }
 0x17f   : > { %v3803_v1 = vadd.f32 %v1473_v63, %v1276_v62  ;;  %v1278_v3 = vpop.f32.mrf.mxu0 }
 0x180   : > { %v1475_v4 = vpop.f32.mrf.mxu1 }
 0x181   : > { %v3805_v5 = vadd.f32 %v1475_v4, %v1278_v3 }
 0x183   : > { %v1282_v8 = vpop.f32.mrf.mxu0 }
 0x184   : > { %v1479_v9 = vpop.f32.mrf.mxu1 }
 0x185   : > { %v3807_v10 = vadd.f32 %v1479_v9, %v1282_v8  ;;  %v1284_v11 = vpop.f32.mrf.mxu0 }
 0x186   : > { %v1481_v14 = vpop.f32.mrf.mxu1 }
 0x187   : > { %v3809_v15 = vadd.f32 %v1481_v14, %v1284_v11  ;;  %v1288_v19 = vpop.f32.mrf.mxu0 }
 0x188   : > { %v1485_v20 = vpop.f32.mrf.mxu1 }
 0x189   : > { %v3811_v22 = vadd.f32 %v1485_v20, %v1288_v19  ;;  %v1290_v23 = vpop.f32.mrf.mxu0 }
 0x18a   : > { %v1487_v27 = vpop.f32.mrf.mxu1 }
 0x18b   : > { %v3813_v28 = vadd.f32 %v1487_v27, %v1290_v23 }
 0x18c   : > { %v1294_v30 = vpop.f32.mrf.mxu0 }
 0x18d   : > { %4137 = vst [vmem:[#allocation5_spill] sm:$0xff] %v3813_v28  ;;  %v1491_v33 = vpop.f32.mrf.mxu1 }
 0x18e   : > { %v3815_v35 = vadd.f32 %v1491_v33, %v1294_v30  ;;  %v1296_v36 = vpop.f32.mrf.mxu0 }
 0x18f   : > { %v1493_v40 = vpop.f32.mrf.mxu1 }
 0x190   : > { %4138 = vst [vmem:[#allocation6_spill] sm:$0xff] %v3815_v35  ;;  %v3817_v41 = vadd.f32 %v1493_v40, %v1296_v36 }
 0x191   : > { %v1300_v45 = vpop.f32.mrf.mxu0 }
 0x192   : > { %4139 = vst [vmem:[#allocation7_spill] sm:$0xff] %v3817_v41  ;;  %v1497_v46 = vpop.f32.mrf.mxu1 }
 0x193   : > { %v3819_v48 = vadd.f32 %v1497_v46, %v1300_v45  ;;  %v1302_v51 = vpop.f32.mrf.mxu0 }
 0x194   : > { %v1499_v53 = vpop.f32.mrf.mxu1 }
 0x195   : > { %4140 = vst [vmem:[#allocation8_spill] sm:$0xff] %v3819_v48  ;;  %v3821_v55 = vadd.f32 %v1499_v53, %v1302_v51 }
 0x196   : > { %v1306_v57 = vpop.f32.mrf.mxu0 }
 0x197   : > { %4141 = vst [vmem:[#allocation9_spill] sm:$0xff] %v3821_v55  ;;  %v1503_v59 = vpop.f32.mrf.mxu1 }
 0x198   : > { %v3823_v62 = vadd.f32 %v1503_v59, %v1306_v57  ;;  %v1308_v63 = vpop.f32.mrf.mxu0 }
 0x199   : > { %v1505_v3 = vpop.f32.mrf.mxu1 }
 0x19a   : > { %4142 = vst [vmem:[#allocation10_spill] sm:$0xff] %v3823_v62  ;;  %v3825_v4 = vadd.f32 %v1505_v3, %v1308_v63 }
 0x19b   : > { %v1574_v8 = vpop.f32.mrf.mxu0 }
 0x19c   : > { %4143 = vst [vmem:[#allocation11_spill] sm:$0xff] %v3825_v4  ;;  %v1771_v9 = vpop.f32.mrf.mxu1  ;;  %v1575_v11 = vadd.f32 %v1574_v8, %v3663_v17 }
 0x19d   : > { %v1576_v14 = vpop.f32.mrf.mxu0 }
 0x19e   : > { %v1773_v19 = vpop.f32.mrf.mxu1  ;;  %v3828_v20 = vadd.f32 %v1771_v9, %v1575_v11  ;;  %v1577_v23 = vadd.f32 %v1576_v14, %v3673_v25 }
 0x19f   : > { %v1580_v27 = vpop.f32.mrf.mxu0 }
 0x1a0   : > { %v1777_v30 = vpop.f32.mrf.mxu1  ;;  %v3831_v33 = vadd.f32 %v1773_v19, %v1577_v23  ;;  %v1581_v36 = vadd.f32 %v1580_v27, %v3677_v32 }
 0x1a1   : > { %v1582_v40 = vpop.f32.mrf.mxu0 }
 0x1a2   : > { %v1779_v45 = vpop.f32.mrf.mxu1  ;;  %v3834_v46 = vadd.f32 %v1777_v30, %v1581_v36  ;;  %v1583_v51 = vadd.f32 %v1582_v40, %v3681_v37 }
 0x1a4   : > { %v3837_v53 = vadd.f32 %v1779_v45, %v1583_v51  ;;  %v1586_v17 = vpop.f32.mrf.mxu0 }
 0x1a5   : > { %v1783_v57 = vpop.f32.mrf.mxu1  ;;  %v1587_v59 = vadd.f32 %v1586_v17, %v3689_v44 }
 0x1a6   : > { %v1588_v63 = vpop.f32.mrf.mxu0 }
 0x1a7   : > { %v1785_v25 = vpop.f32.mrf.mxu1  ;;  %v3840_v3 = vadd.f32 %v1783_v57, %v1587_v59  ;;  %v1589_v8 = vadd.f32 %v1588_v63, %v3695_v49 }
 0x1a8   : > { %v1592_v9 = vpop.f32.mrf.mxu0 }
 0x1a9   : > { %v1789_v32 = vpop.f32.mrf.mxu1  ;;  %v3843_v11 = vadd.f32 %v1785_v25, %v1589_v8  ;;  %v1593_v14 = vadd.f32 %v1592_v9, %v3699_v54 }
 0x1aa   : > { %v1594_v19 = vpop.f32.mrf.mxu0 }
 0x1ab   : > { %v1791_v37 = vpop.f32.mrf.mxu1  ;;  %v3846_v23 = vadd.f32 %v1789_v32, %v1593_v14  ;;  %v1595_v27 = vadd.f32 %v1594_v19, %v3707_v61 }
 0x1ad   : > { %v3849_v30 = vadd.f32 %v1791_v37, %v1595_v27  ;;  %v1598_v44 = vpop.f32.mrf.mxu0 }
 0x1ae   : > { %v1795_v36 = vpop.f32.mrf.mxu1  ;;  %v1599_v40 = vadd.f32 %v1598_v44, %v3713_v2 }
 0x1af   : > { %v1600_v45 = vpop.f32.mrf.mxu0 }
 0x1b0   : > { %v1797_v49 = vpop.f32.mrf.mxu1  ;;  %v3852_v51 = vadd.f32 %v1795_v36, %v1599_v40  ;;  %v1601_v17 = vadd.f32 %v1600_v45, %v3717_v7 }
 0x1b1   : > { %v1604_v57 = vpop.f32.mrf.mxu0 }
 0x1b2   : > { %v1801_v54 = vpop.f32.mrf.mxu1  ;;  %v3855_v59 = vadd.f32 %v1797_v49, %v1601_v17  ;;  %v1605_v63 = vadd.f32 %v1604_v57, %v3723_v12 }
 0x1b3   : > { %v1606_v25 = vpop.f32.mrf.mxu0 }
 0x1b4   : > { %v1803_v61 = vpop.f32.mrf.mxu1  ;;  %v3858_v8 = vadd.f32 %v1801_v54, %v1605_v63  ;;  %v1607_v9 = vadd.f32 %v1606_v25, %v3727_v18 }
 0x1b5   : > { %v1610_v32 = vpop.f32.mrf.mxu0 }
 0x1b6   : > { %v1807_v2 = vpop.f32.mrf.mxu1  ;;  %v3861_v14 = vadd.f32 %v1803_v61, %v1607_v9  ;;  %v1611_v19 = vadd.f32 %v1610_v32, %v3735_v26 }
 0x1b7   : > { %v1612_v37 = vpop.f32.mrf.mxu0 }
 0x1b8   : > { %4144 = vst [vmem:[#allocation12_spill] sm:$0xff] %v3861_v14  ;;  %v1809_v7 = vpop.f32.mrf.mxu1  ;;  %v3864_v27 = vadd.f32 %v1807_v2, %v1611_v19  ;;  %v1613_v44 = vadd.f32 %v1612_v37, %v3741_v31 }
 0x1b9   : > { %v1616_v36 = vpop.f32.mrf.mxu0 }
 0x1ba   : > { %4145 = vst [vmem:[#allocation13_spill] sm:$0xff] %v3864_v27  ;;  %v1813_v12 = vpop.f32.mrf.mxu1  ;;  %v3867_v40 = vadd.f32 %v1809_v7, %v1613_v44  ;;  %v1617_v45 = vadd.f32 %v1616_v36, %v3745_v38 }
 0x1bb   : > { %v1618_v49 = vpop.f32.mrf.mxu0 }
 0x1bc   : > { %4146 = vst [vmem:[#allocation14_spill] sm:$0xff] %v3867_v40  ;;  %v1815_v18 = vpop.f32.mrf.mxu1  ;;  %v3870_v17 = vadd.f32 %v1813_v12, %v1617_v45  ;;  %v1619_v57 = vadd.f32 %v1618_v49, %v3751_v43 }
 0x1be   : > { %4147 = vst [vmem:[#allocation15_spill] sm:$0xff] %v3870_v17  ;;  %v3873_v54 = vadd.f32 %v1815_v18, %v1619_v57  ;;  %v1622_v26 = vpop.f32.mrf.mxu0 }
 0x1bf   : > { %v1819_v63 = vpop.f32.mrf.mxu1  ;;  %v1623_v25 = vadd.f32 %v1622_v26, %v3755_v50 }
 0x1c0   : > { %4148 = vst [vmem:[#allocation16_spill] sm:$0xff] %v3873_v54  ;;  %v1624_v61 = vpop.f32.mrf.mxu0 }
 0x1c1   : > { %v1821_v31 = vpop.f32.mrf.mxu1  ;;  %v3876_v9 = vadd.f32 %v1819_v63, %v1623_v25  ;;  %v1625_v32 = vadd.f32 %v1624_v61, %v3763_v58 }
 0x1c3   : > { %4149 = vst [vmem:[#allocation17_spill] sm:$0xff] %v3876_v9  ;;  %v3879_v2 = vadd.f32 %v1821_v31, %v1625_v32  ;;  %v1628_v38 = vpop.f32.mrf.mxu0 }
 0x1c4   : > { %v1825_v19 = vpop.f32.mrf.mxu1  ;;  %v1629_v37 = vadd.f32 %v1628_v38, %v3769_v0 }
 0x1c5   : > { %4150 = vst [vmem:[#allocation18_spill] sm:$0xff] %v3879_v2  ;;  %v1630_v7 = vpop.f32.mrf.mxu0 }
 0x1c6   : > { %v1827_v43 = vpop.f32.mrf.mxu1  ;;  %v3882_v44 = vadd.f32 %v1825_v19, %v1629_v37  ;;  %v1631_v36 = vadd.f32 %v1630_v7, %v3773_v6 }
 0x1c7   : > { %v1634_v12 = vpop.f32.mrf.mxu0 }
 0x1c8   : > { %4151 = vst [vmem:[#allocation19_spill] sm:$0xff] %v3882_v44  ;;  %v1831_v50 = vpop.f32.mrf.mxu1  ;;  %v3885_v45 = vadd.f32 %v1827_v43, %v1631_v36  ;;  %v1635_v49 = vadd.f32 %v1634_v12, %v3779_v13 }
 0x1c9   : > { %v1636_v18 = vpop.f32.mrf.mxu0 }
 0x1ca   : > { %4152 = vst [vmem:[#allocation20_spill] sm:$0xff] %v3885_v45  ;;  %v1833_v58 = vpop.f32.mrf.mxu1  ;;  %v3888_v57 = vadd.f32 %v1831_v50, %v1635_v49  ;;  %v1637_v26 = vadd.f32 %v1636_v18, %v3781_v16 }
 0x1cb   : > { %v1640_v63 = vpop.f32.mrf.mxu0 }
 0x1cc   : > { %4153 = vst [vmem:[#allocation21_spill] sm:$0xff] %v3888_v57  ;;  %v1837_v0 = vpop.f32.mrf.mxu1  ;;  %v3891_v25 = vadd.f32 %v1833_v58, %v1637_v26 }
 0x1cd   : > { %v1642_v61 = vpop.f32.mrf.mxu0 }
 0x1ce   : > { %4154 = vst [vmem:[#allocation22_spill] sm:$0xff] %v3891_v25  ;;  %v1839_v31 = vpop.f32.mrf.mxu1 }
 0x1cf   : > { %v1646_v32 = vpop.f32.mrf.mxu0 }
 0x1d0   : > { %v1843_v6 = vpop.f32.mrf.mxu1 }
 0x1d1   : > { %v1648_v38 = vpop.f32.mrf.mxu0 }
 0x1d2   : > { %v3893_v19 = vpop.f32.mrf.mxu1 }
 0x1d4   : > { %v1652_v37 = vpop.f32.mrf.mxu0 }
 0x1d5   : > { %v3895_v7 = vpop.f32.mrf.mxu1 }
 0x1d6   : > { %v1654_v13 = vpop.f32.mrf.mxu0 }
 0x1d7   : > { %v3897_v43 = vpop.f32.mrf.mxu1 }
 0x1d8   : > { %v3899_v36 = vpop.f32.mrf.mxu0 }
 0x1d9   : > { %v3901_v16 = vpop.f32.mrf.mxu1 }
 0x1da   : > { %v3903_v12 = vpop.f32.mrf.mxu0 }
 0x1db   : > { %v3905_v50 = vpop.f32.mrf.mxu1 }
 0x1dd   : > { %v3907_v49 = vpop.f32.mrf.mxu0 }
 0x1de   : > { %v3909_v18 = vpop.f32.mrf.mxu1 }
 0x1df   : > { %v3911_v58 = vpop.f32.mrf.mxu0 }
 0x1e0   : > { %v3913_v26 = vpop.f32.mrf.mxu1 }
 0x1e1   : > { %v3915_v25 = vpop.f32.mrf.mxu0 }
 0x1e2   : > { %v3917_v57 = vpop.f32.mrf.mxu1 }
 0x1e3   : > { %v3919_v45 = vpop.f32.mrf.mxu0 }
 0x1e4   : > { %v3921_v44 = vpop.f32.mrf.mxu1 }
 0x1e5   : > { %v3923_v4 = vpop.f32.mrf.mxu0 }
 0x1e6   : > { %v3925_v2 = vpop.f32.mrf.mxu1 }
 0x1e7   : > { %v3927_v62 = vpop.f32.mrf.mxu0 }
 0x1e8   : > { %v3929_v9 = vpop.f32.mrf.mxu1 }
 0x1e9   : > { %4155 = vst [vmem:[#allocation23_spill] sm:$0xff] %v3929_v9  ;;  %v3931_v55 = vpop.f32.mrf.mxu0 }
 0x1ea   : > { %v3933_v54 = vpop.f32.mrf.mxu1 }
 0x1eb   : > { %4156 = vst [vmem:[#allocation24_spill] sm:$0xff] %v3933_v54  ;;  %v3935_v48 = vpop.f32.mrf.mxu0 }
 0x1ec   : > { %4157 = vst [vmem:[#allocation25_spill] sm:$0xff] %v3935_v48  ;;  %v3937_v17 = vpop.f32.mrf.mxu1 }
 0x1ed   : > { %4158 = vst [vmem:[#allocation26_spill] sm:$0xff] %v3937_v17  ;;  %v1641_v17 = vadd.f32 %v1640_v63, %v3783_v21 }
 0x1ee   : > { %v3940_v41 = vpop.f32.mrf.mxu0 }
 0x1ef   : > { %4159 = vst [vmem:[#allocation27_spill] sm:$0xff] %v3940_v41  ;;  %v3942_v40 = vpop.f32.mrf.mxu1 }
 0x1f0   : > { %4160 = vst [vmem:[#allocation28_spill] sm:$0xff] %v3942_v40  ;;  %v3944_v35 = vpop.f32.mrf.mxu0  ;;  %v1643_v40 = vadd.f32 %v1642_v61, %v3785_v24  ;;  %v1649_v24 = vadd.f32 %v1648_v38, %v3789_v34 }
 0x1f1   : > { %4161 = vst [vmem:[#allocation29_spill] sm:$0xff] %v3944_v35  ;;  %v3946_v27 = vpop.f32.mrf.mxu1 }
 0x1f2   : > { %4162 = vst [vmem:[#allocation30_spill] sm:$0xff] %v3946_v27  ;;  %v1846_v38 = vadd.f32 %v3893_v19, %v1649_v24 }
 0x1f3   : > { %v3948_v28 = vpop.f32.mrf.mxu0 }
 0x1f4   : > { %4163 = vst [vmem:[#allocation31_spill] sm:$0xff] %v3948_v28  ;;  %v3950_v9 = vpop.f32.mrf.mxu1  ;;  %v1838_v28 = vadd.f32 %v1837_v0, %v1641_v17 }
 0x1f5   : > { %4164 = vst [vmem:[#allocation32_spill] sm:$0xff] %v3950_v9  ;;  %v3952_v54 = vpop.f32.mrf.mxu0  ;;  %v1647_v9 = vadd.f32 %v1646_v32, %v3787_v29  ;;  %v1653_v32 = vadd.f32 %v1652_v37, %v3791_v39 }
 0x1f6   : > { %v3954_v48 = vpop.f32.mrf.mxu1 }
 0x1f7   : > { %v3957_v14 = vpop.f32.mrf.mxu0  ;;  %v1844_v0 = vadd.f32 %v1843_v6, %v1647_v9 }
 0x1f8   : > { %v3959_v41 = vpop.f32.mrf.mxu1 }
 0x1f9   : > { %4165 = vst [vmem:[#allocation33_spill] sm:$0xff] %v3959_v41  ;;  %v3962_v27 = vpop.f32.mrf.mxu0  ;;  %v1840_v41 = vadd.f32 %v1839_v31, %v1643_v40 }
 0x1fa   : > { %4166 = vst [vmem:[#allocation34_spill] sm:$0xff] %v3962_v27  ;;  %v3964_v35 = vpop.f32.mrf.mxu1 }
 0x1fb   : > { %4167 = vst [vmem:[#allocation35_spill] sm:$0xff] %v3964_v35  ;;  %v1968_v21 = vpop.f32.mrf.mxu0 }
 0x1fc   : > { %v2034_v63 = vpop.f32.mrf.mxu1  ;;  %v1969_v61 = vadd.f32 %v1968_v21, %v3828_v20  ;;  %v1655_v20 = vadd.f32 %v1654_v13, %v3793_v42  ;;  %v1665_v21 = vadd.f32 %v3907_v49, %v3799_v56 }
 0x1fd   : > { %v2035_v35 = vadd.f32 %v2034_v63, %v1838_v28  ;;  %v1970_v17 = vpop.f32.mrf.mxu0 }
 0x1fe   : > { %v2036_v29 = vpop.f32.mrf.mxu1  ;;  %2099 = vst [vmem:[%s3970_s15] sm:$0xff] %v1969_v61  ;;  %v1971_v27 = vadd.f32 %v1970_v17, %v3831_v33  ;;  %v1850_v33 = vadd.f32 %v3895_v7, %v1653_v32  ;;  %v1852_v37 = vadd.f32 %v3897_v43, %v1655_v20  ;;  %v1671_v17 = vadd.f32 %v3915_v25, %v3803_v1 }
 0x1ff   : > { %2122 = vst [vmem:[%s3970_s15 + $0xb0] sm:$0xff] %v2035_v35  ;;  %v2037_v40 = vadd.f32 %v2036_v29, %v1840_v41  ;;  %v1974_v31 = vpop.f32.mrf.mxu0  ;;  %v1659_v41 = vadd.f32 %v3899_v36, %v3795_v47  ;;  %v1683_v20 = vadd.f32 %v3931_v55, %v3811_v22  ;;  %v4172_v22 = vld [vmem:[#allocation13_spill] sm:$0xff] }
 0x200   : > { %v2040_v34 = vpop.f32.mrf.mxu1  ;;  %2101 = vst.msk [vmem:[%s3970_s15 + $0x8] sm:$0xff] %vm2100_vm1, %v1971_v27  ;;  %v1975_v39 = vadd.f32 %v1974_v31, %v3834_v46  ;;  %v1661_v46 = vadd.f32 %v3903_v12, %v3797_v52 }
 0x201   : > { %2123 = vst.msk [vmem:[%s3970_s15 + $0xb8] sm:$0xff] %vm2100_vm1, %v2037_v40  ;;  %v2041_v28 = vadd.f32 %v2040_v34, %v1844_v0  ;;  %v1976_v35 = vpop.f32.mrf.mxu0  ;;  %v1677_v40 = vadd.f32 %v3923_v4, %v3807_v10 }
 0x202   : > { %v2042_v9 = vpop.f32.mrf.mxu1  ;;  %2102 = vst [vmem:[%s3970_s15 + $0x10] sm:$0xff] %v1975_v39  ;;  %v1977_v42 = vadd.f32 %v1976_v35, %v3837_v53  ;;  %v1856_v53 = vadd.f32 %v3901_v16, %v1659_v41  ;;  %v1858_v24 = vadd.f32 %v3905_v50, %v1661_v46  ;;  %v4169_v35 = vld [vmem:[#allocation23_spill] sm:$0xff] }
 0x203   : > { %2124 = vst [vmem:[%s3970_s15 + $0xc0] sm:$0xff] %v2041_v28  ;;  %v2043_v27 = vadd.f32 %v2042_v9, %v1846_v38  ;;  %v1980_v6 = vpop.f32.mrf.mxu0  ;;  %v4175_v46 = vld [vmem:[#allocation27_spill] sm:$0xff] }
 0x204   : > { %v2046_v19 = vpop.f32.mrf.mxu1  ;;  %2103 = vst.msk [vmem:[%s3970_s15 + $0x18] sm:$0xff] %vm2100_vm1, %v1977_v42  ;;  %v1981_v47 = vadd.f32 %v1980_v6, %v3840_v3  ;;  %v1667_v3 = vadd.f32 %v3911_v58, %v3801_v60  ;;  %v4173_v6 = vld [vmem:[#allocation24_spill] sm:$0xff] }
 0x205   : > { %2125 = vst.msk [vmem:[%s3970_s15 + $0xc8] sm:$0xff] %vm2100_vm1, %v2043_v27  ;;  %v2047_v7 = vadd.f32 %v2046_v19, %v1850_v33  ;;  %v1982_v13 = vpop.f32.mrf.mxu0  ;;  %v4171_v33 = vld [vmem:[#allocation25_spill] sm:$0xff]  ;;  %v1880_v19 = vadd.f32 %v4173_v6, %v1683_v20  ;;  %v4196_v6 = vld [vmem:[#allocation35_spill] sm:$0xff] }
 0x206   : > { %v2048_v36 = vpop.f32.mrf.mxu1  ;;  %2104 = vst [vmem:[%s3970_s15 + $0x20] sm:$0xff] %v1981_v47  ;;  %v1983_v52 = vadd.f32 %v1982_v13, %v3843_v11  ;;  %v1862_v11 = vadd.f32 %v3909_v18, %v1665_v21  ;;  %v1864_v0 = vadd.f32 %v3913_v26, %v1667_v3  ;;  %v4180_v3 = vld [vmem:[#allocation15_spill] sm:$0xff] }
 0x207   : > { %2126 = vst [vmem:[%s3970_s15 + $0xd0] sm:$0xff] %v2047_v7  ;;  %v2049_v43 = vadd.f32 %v2048_v36, %v1852_v37  ;;  %v1986_v12 = vpop.f32.mrf.mxu0  ;;  %v4174_v37 = vld [vmem:[#allocation6_spill] sm:$0xff] }
 0x208   : > { %v2052_v63 = vpop.f32.mrf.mxu1  ;;  %2105 = vst.msk [vmem:[%s3970_s15 + $0x28] sm:$0xff] %vm2100_vm1, %v1983_v52  ;;  %v1987_v56 = vadd.f32 %v1986_v12, %v3846_v23  ;;  %v1673_v23 = vadd.f32 %v3919_v45, %v3805_v5  ;;  %v1689_v47 = vadd.f32 %v4175_v46, %v4174_v37  ;;  %v4176_v7 = vld [vmem:[#allocation14_spill] sm:$0xff]  ;;  %v4178_v12 = vld [vmem:[#allocation7_spill] sm:$0xff]  ;;  %v4197_v37 = vld [vmem:[#allocation21_spill] sm:$0xff] }
 0x209   : > { %2127 = vst.msk [vmem:[%s3970_s15 + $0xd8] sm:$0xff] %vm2100_vm1, %v2049_v43  ;;  %v2053_v16 = vadd.f32 %v2052_v63, %v1856_v53  ;;  %v1988_v49 = vpop.f32.mrf.mxu0  ;;  %v4177_v52 = vld [vmem:[#allocation26_spill] sm:$0xff]  ;;  %v4179_v63 = vld [vmem:[#allocation29_spill] sm:$0xff] }
 0x20a   : > { %v2054_v61 = vpop.f32.mrf.mxu1  ;;  %2106 = vst [vmem:[%s3970_s15 + $0x30] sm:$0xff] %v1987_v56  ;;  %v1989_v60 = vadd.f32 %v1988_v49, %v3849_v30  ;;  %v1868_v30 = vadd.f32 %v3917_v57, %v1671_v17  ;;  %v1870_v34 = vadd.f32 %v3921_v44, %v1673_v23 }
 0x20b   : > { %2128 = vst [vmem:[%s3970_s15 + $0xe0] sm:$0xff] %v2053_v16  ;;  %v2055_v50 = vadd.f32 %v2054_v61, %v1858_v24  ;;  %v1992_v58 = vpop.f32.mrf.mxu0  ;;  %v1691_v24 = vadd.f32 %v4179_v63, %v4178_v12 }
 0x20c   : > { %v2058_v29 = vpop.f32.mrf.mxu1  ;;  %2107 = vst.msk [vmem:[%s3970_s15 + $0x38] sm:$0xff] %vm2100_vm1, %v1989_v60  ;;  %v1993_v1 = vadd.f32 %v1992_v58, %v3852_v51  ;;  %v1679_v51 = vadd.f32 %v3927_v62, %v3809_v15  ;;  %v4168_v15 = vld [vmem:[#allocation12_spill] sm:$0xff] }
 0x20d   : > { %2129 = vst.msk [vmem:[%s3970_s15 + $0xe8] sm:$0xff] %vm2100_vm1, %v2055_v50  ;;  %v2059_v25 = vadd.f32 %v2058_v29, %v1862_v11  ;;  %v1994_v18 = vpop.f32.mrf.mxu0  ;;  %v4181_v11 = vld [vmem:[#allocation28_spill] sm:$0xff]  ;;  %v4183_v50 = vld [vmem:[#allocation31_spill] sm:$0xff] }
 0x20e   : > { %v2060_v32 = vpop.f32.mrf.mxu1  ;;  %2108 = vst [vmem:[%s3970_s15 + $0x40] sm:$0xff] %v1993_v1  ;;  %v1995_v5 = vadd.f32 %v1994_v18, %v3855_v59  ;;  %v1874_v59 = vadd.f32 %v3925_v2, %v1677_v40  ;;  %v1876_v9 = vadd.f32 %v4169_v35, %v1679_v51  ;;  %v1886_v17 = vadd.f32 %v4181_v11, %v1689_v47  ;;  %v4182_v60 = vld [vmem:[#allocation8_spill] sm:$0xff]  ;;  %v4185_v18 = vld [vmem:[#allocation30_spill] sm:$0xff] }
 0x20f   : > { %2130 = vst [vmem:[%s3970_s15 + $0xf0] sm:$0xff] %v2059_v25  ;;  %v2061_v45 = vadd.f32 %v2060_v32, %v1864_v0  ;;  %v1998_v26 = vpop.f32.mrf.mxu0  ;;  %v1695_v58 = vadd.f32 %v4183_v50, %v4182_v60  ;;  %v4184_v29 = vld [vmem:[#allocation16_spill] sm:$0xff]  ;;  %v1888_v32 = vadd.f32 %v4185_v18, %v1691_v24 }
 0x210   : > { %v2064_v31 = vpop.f32.mrf.mxu1  ;;  %2109 = vst.msk [vmem:[%s3970_s15 + $0x48] sm:$0xff] %vm2100_vm1, %v1995_v5  ;;  %v1999_v10 = vadd.f32 %v1998_v26, %v3858_v8  ;;  %v4170_v8 = vld [vmem:[#allocation5_spill] sm:$0xff]  ;;  %v4188_v51 = vld [vmem:[#allocation32_spill] sm:$0xff] }
 0x211   : > { %2131 = vst.msk [vmem:[%s3970_s15 + $0xf8] sm:$0xff] %vm2100_vm1, %v2061_v45  ;;  %v2065_v4 = vadd.f32 %v2064_v31, %v1868_v30  ;;  %v2000_v57 = vpop.f32.mrf.mxu0  ;;  %v1685_v41 = vadd.f32 %v4171_v33, %v4170_v8  ;;  %v4186_v30 = vld [vmem:[#allocation9_spill] sm:$0xff] }
 0x212   : > { %v2066_v38 = vpop.f32.mrf.mxu1  ;;  %2110 = vst [vmem:[%s3970_s15 + $0x50] sm:$0xff] %v1999_v10  ;;  %v2001_v62 = vadd.f32 %v2000_v57, %v4168_v15  ;;  %v1697_v40 = vadd.f32 %v3952_v54, %v4186_v30  ;;  %v4187_v5 = vld [vmem:[#allocation17_spill] sm:$0xff]  ;;  %v1892_v10 = vadd.f32 %v4188_v51, %v1695_v58  ;;  %v4190_v54 = vld [vmem:[#allocation18_spill] sm:$0xff] }
 0x213   : > { %2132 = vst [vmem:[%s3970_s15 + $0x100] sm:$0xff] %v2065_v4  ;;  %v2067_v44 = vadd.f32 %v2066_v38, %v1870_v34  ;;  %v2004_v39 = vpop.f32.mrf.mxu0  ;;  %v1882_v43 = vadd.f32 %v4177_v52, %v1685_v41  ;;  %v4189_v4 = vld [vmem:[#allocation10_spill] sm:$0xff]  ;;  %v4194_v41 = vld [vmem:[#allocation33_spill] sm:$0xff] }
 0x214   : > { %v2070_v28 = vpop.f32.mrf.mxu1  ;;  %2111 = vst.msk [vmem:[%s3970_s15 + $0x58] sm:$0xff] %vm2100_vm1, %v2001_v62  ;;  %v2005_v55 = vadd.f32 %v2004_v39, %v4172_v22  ;;  %v1701_v57 = vadd.f32 %v3957_v14, %v4189_v4  ;;  %v1894_v62 = vadd.f32 %v3954_v48, %v1697_v40  ;;  %v4192_v39 = vld [vmem:[#allocation34_spill] sm:$0xff]  ;;  %v4193_v14 = vld [vmem:[#allocation19_spill] sm:$0xff]  ;;  %v4195_v48 = vld [vmem:[#allocation20_spill] sm:$0xff] }
 0x215   : > { %2133 = vst.msk [vmem:[%s3970_s15 + $0x108] sm:$0xff] %vm2100_vm1, %v2067_v44  ;;  %v2071_v2 = vadd.f32 %v2070_v28, %v1874_v59  ;;  %v2006_v42 = vpop.f32.mrf.mxu0  ;;  %v4191_v44 = vld [vmem:[#allocation11_spill] sm:$0xff] }
 0x216   : > { %v2072_v27 = vpop.f32.mrf.mxu1  ;;  %2112 = vst [vmem:[%s3970_s15 + $0x60] sm:$0xff] %v2005_v55  ;;  %v2007_v13 = vadd.f32 %v2006_v42, %v4176_v7  ;;  %v1703_v28 = vadd.f32 %v4192_v39, %v4191_v44  ;;  %v1898_v22 = vadd.f32 %v4194_v41, %v1701_v57 }
 0x217   : > { %2134 = vst [vmem:[%s3970_s15 + $0x110] sm:$0xff] %v2071_v2  ;;  %v2073_v36 = vadd.f32 %v2072_v27, %v1876_v9  ;;  %v2010_v53 = vpop.f32.mrf.mxu0 }
 0x218   : > { %v2076_v21 = vpop.f32.mrf.mxu1  ;;  %2113 = vst.msk [vmem:[%s3970_s15 + $0x68] sm:$0xff] %vm2100_vm1, %v2007_v13  ;;  %v2011_v56 = vadd.f32 %v2010_v53, %v4180_v3 }
 0x219   : > { %2135 = vst.msk [vmem:[%s3970_s15 + $0x118] sm:$0xff] %vm2100_vm1, %v2073_v36  ;;  %v2077_v16 = vadd.f32 %v2076_v21, %v1880_v19  ;;  %v2012_v49 = vpop.f32.mrf.mxu0  ;;  %v1900_v19 = vadd.f32 %v4196_v6, %v1703_v28  ;;  %v4198_v36 = vld [vmem:[#allocation22_spill] sm:$0xff] }
 0x21a   : > { %v2078_v61 = vpop.f32.mrf.mxu1  ;;  %2114 = vst [vmem:[%s3970_s15 + $0x70] sm:$0xff] %v2011_v56  ;;  %v2013_v0 = vadd.f32 %v2012_v49, %v4184_v29 }
 0x21b   : > { %2136 = vst [vmem:[%s3970_s15 + $0x120] sm:$0xff] %v2077_v16  ;;  %v2079_v23 = vadd.f32 %v2078_v61, %v1882_v43  ;;  %v2016_v1 = vpop.f32.mrf.mxu0 }
 0x21c   : > { %v2082_v25 = vpop.f32.mrf.mxu1  ;;  %2115 = vst.msk [vmem:[%s3970_s15 + $0x78] sm:$0xff] %vm2100_vm1, %v2013_v0  ;;  %v2017_v45 = vadd.f32 %v2016_v1, %v4187_v5 }
 0x21d   : > { %2137 = vst.msk [vmem:[%s3970_s15 + $0x128] sm:$0xff] %vm2100_vm1, %v2079_v23  ;;  %v2083_v26 = vadd.f32 %v2082_v25, %v1886_v17  ;;  %v2018_v31 = vpop.f32.mrf.mxu0 }
 0x21e   : > { %v2084_v34 = vpop.f32.mrf.mxu1  ;;  %2116 = vst [vmem:[%s3970_s15 + $0x80] sm:$0xff] %v2017_v45  ;;  %v2019_v38 = vadd.f32 %v2018_v31, %v4190_v54 }
 0x21f   : > { %2138 = vst [vmem:[%s3970_s15 + $0x130] sm:$0xff] %v2083_v26  ;;  %v2085_v59 = vadd.f32 %v2084_v34, %v1888_v32  ;;  %v2022_v20 = vpop.f32.mrf.mxu0 }
 0x220   : > { %v2088_v15 = vpop.f32.mrf.mxu1  ;;  %2117 = vst.msk [vmem:[%s3970_s15 + $0x88] sm:$0xff] %vm2100_vm1, %v2019_v38  ;;  %v2023_v35 = vadd.f32 %v2022_v20, %v4193_v14 }
 0x221   : > { %2139 = vst.msk [vmem:[%s3970_s15 + $0x138] sm:$0xff] %vm2100_vm1, %v2085_v59  ;;  %v2089_v9 = vadd.f32 %v2088_v15, %v1892_v10  ;;  %v2024_v8 = vpop.f32.mrf.mxu0 }
 0x222   : > { %v2090_v33 = vpop.f32.mrf.mxu1  ;;  %2118 = vst [vmem:[%s3970_s15 + $0x90] sm:$0xff] %v2023_v35  ;;  %v2025_v55 = vadd.f32 %v2024_v8, %v4195_v48 }
 0x223   : > { %2140 = vst [vmem:[%s3970_s15 + $0x140] sm:$0xff] %v2089_v9  ;;  %v2091_v2 = vadd.f32 %v2090_v33, %v1894_v62  ;;  %v2028_v42 = vpop.f32.mrf.mxu0 }
 0x224   : > { %v2094_v27 = vpop.f32.mrf.mxu1  ;;  %2119 = vst.msk [vmem:[%s3970_s15 + $0x98] sm:$0xff] %vm2100_vm1, %v2025_v55  ;;  %v2029_v46 = vadd.f32 %v2028_v42, %v4197_v37 }
 0x225   : > { %2141 = vst.msk [vmem:[%s3970_s15 + $0x148] sm:$0xff] %vm2100_vm1, %v2091_v2  ;;  %v2095_v47 = vadd.f32 %v2094_v27, %v1898_v22  ;;  %v2030_v7 = vpop.f32.mrf.mxu0 }
 0x226   : > { %v2096_v13 = vpop.f32.mrf.mxu1  ;;  %2120 = vst [vmem:[%s3970_s15 + $0xa0] sm:$0xff] %v2029_v46  ;;  %v2031_v53 = vadd.f32 %v2030_v7, %v4198_v36 }
 0x227   : > { %2142 = vst [vmem:[%s3970_s15 + $0x150] sm:$0xff] %v2095_v47  ;;  %v2097_v21 = vadd.f32 %v2096_v13, %v1900_v19 }
 0x228   : > { %2121 = vst.msk [vmem:[%s3970_s15 + $0xa8] sm:$0xff] %vm2100_vm1, %v2031_v53 }
 0x229   : > { %2143 = vst.msk [vmem:[%s3970_s15 + $0x158] sm:$0xff] %vm2100_vm1, %v2097_v21 }
 0x22a PF: > { %s15_s14 = sadd.s32 1, %s2482_s14   ;;  %s4199_s9 = smov %s2466_s10 }
 0x22b   : > { %p12_p8 = scmp.ge.s32.totalorder %s15_s14, 9   ;;  %s4200_s10 = smov %s2470_s11 }
 0x22c   : > { %s4201_s11 = smov %s2547_s20  ;;  %s4202_s12 = smov %s2478_s13 }
 0x22d   : > { %s4203_s13 = smov %s4205_s16  ;;  %14 = sbr.rel (!%p12_p8) target bundleno = 4 (0x4), region = 71 }
 0x232   :  { %2176 = vsyncpa [#allocation3], 1 }
 0x233   :  { %2178 = vsyncpa [#allocation3 + $0x1], 1 }

</bundles_post_ra>
